<compile_context>
chip_gen: v5e
topology: v5e:2x2
jax: 0.10.0
libtpu: 0.0.40
codegen_flags: <defaults>
</compile_context>

<pallas_src>
import functools

import jax
import jax.numpy as jnp
from jax.experimental import pallas as pl
from jax.experimental.pallas import tpu as pltpu

_LANE = 128
_TILE_M = 256
_VMEM_LIMIT = 48 * 1024 * 1024  # fits v7x's 64 MiB with headroom


def _round_up(x, m):
    return (x + m - 1) // m * m


def _compiler_params(semantics):
    return pltpu.CompilerParams(
        dimension_semantics=semantics, vmem_limit_bytes=_VMEM_LIMIT
    )


# ----------------------------------------------------------------------------
# Pallas kernels
# ----------------------------------------------------------------------------
def _conv_bias_act_kernel(a_ref, w_ref, b_ref, o_ref, *, act):
    """bf16 im2col matmul (f32 acc) + bias (+ optional LeakyReLU(0.2))."""
    acc = jnp.dot(a_ref[...], w_ref[...], preferred_element_type=jnp.float32)
    acc = acc + b_ref[...]                      # (1, C_pad) broadcast, f32
    if act:
        acc = jnp.where(acc > 0, acc, 0.2 * acc)
    o_ref[...] = acc


def conv_bias_act(a, w, b, tile_m, act):
    M_pad, K_pad = a.shape
    _, C_pad = w.shape
    grid = (M_pad // tile_m,)
    kernel = functools.partial(_conv_bias_act_kernel, act=act)
    return pl.pallas_call(
        kernel,
        out_shape=jax.ShapeDtypeStruct((M_pad, C_pad), jnp.float32),
        grid=grid,
        in_specs=[
            pl.BlockSpec((tile_m, K_pad), lambda i: (i, 0)),
            pl.BlockSpec((K_pad, C_pad), lambda i: (0, 0)),   # resident weight
            pl.BlockSpec((1, C_pad), lambda i: (0, 0)),
        ],
        out_specs=pl.BlockSpec((tile_m, C_pad), lambda i: (i, 0)),
        compiler_params=_compiler_params(("parallel",)),
    )(a, w, b)


def _conv_stats_kernel(a_ref, w_ref, y_ref, sum_ref, sq_ref):
    """bf16 matmul (no bias) + fused per-channel sum / sum-of-squares."""
    @pl.when(pl.program_id(0) == 0)
    def _():
        sum_ref[...] = jnp.zeros_like(sum_ref)
        sq_ref[...] = jnp.zeros_like(sq_ref)

    y = jnp.dot(a_ref[...], w_ref[...], preferred_element_type=jnp.float32)
    y_ref[...] = y
    sum_ref[...] += jnp.sum(y, axis=0, keepdims=True)
    sq_ref[...] += jnp.sum(y * y, axis=0, keepdims=True)


def conv_stats(a, w, tile_m):
    M_pad, K_pad = a.shape
    _, C_pad = w.shape
    grid = (M_pad // tile_m,)
    return pl.pallas_call(
        _conv_stats_kernel,
        out_shape=(
            jax.ShapeDtypeStruct((M_pad, C_pad), jnp.float32),
            jax.ShapeDtypeStruct((1, C_pad), jnp.float32),
            jax.ShapeDtypeStruct((1, C_pad), jnp.float32),
        ),
        grid=grid,
        in_specs=[
            pl.BlockSpec((tile_m, K_pad), lambda i: (i, 0)),
            pl.BlockSpec((K_pad, C_pad), lambda i: (0, 0)),   # resident weight
        ],
        out_specs=(
            pl.BlockSpec((tile_m, C_pad), lambda i: (i, 0)),
            pl.BlockSpec((1, C_pad), lambda i: (0, 0)),        # resident acc
            pl.BlockSpec((1, C_pad), lambda i: (0, 0)),        # resident acc
        ),
        # stats accumulate across the M grid -> must run sequentially
        compiler_params=_compiler_params(("arbitrary",)),
    )(a, w)


def _bn_lrelu_kernel(y_ref, sum_ref, sq_ref, g_ref, b_ref, o_ref, *, eps, inv_m):
    """BatchNorm2d (training batch stats, biased var) + LeakyReLU(0.2)."""
    y = y_ref[...]
    mean = sum_ref[...] * inv_m
    var = jnp.maximum(sq_ref[...] * inv_m - mean * mean, 0.0)
    scale = g_ref[...] * jax.lax.rsqrt(var + eps)
    shift = b_ref[...] - mean * scale
    out = y * scale + shift
    o_ref[...] = jnp.where(out > 0, out, 0.2 * out)


def bn_lrelu(y, ssum, ssq, gamma, beta, tile_m, m_real, eps=1e-5):
    M_pad, C_pad = y.shape
    grid = (M_pad // tile_m,)
    kernel = functools.partial(_bn_lrelu_kernel, eps=eps, inv_m=1.0 / m_real)
    return pl.pallas_call(
        kernel,
        out_shape=jax.ShapeDtypeStruct((M_pad, C_pad), jnp.float32),
        grid=grid,
        in_specs=[
            pl.BlockSpec((tile_m, C_pad), lambda i: (i, 0)),
            pl.BlockSpec((1, C_pad), lambda i: (0, 0)),
            pl.BlockSpec((1, C_pad), lambda i: (0, 0)),
            pl.BlockSpec((1, C_pad), lambda i: (0, 0)),
            pl.BlockSpec((1, C_pad), lambda i: (0, 0)),
        ],
        out_specs=pl.BlockSpec((tile_m, C_pad), lambda i: (i, 0)),
        compiler_params=_compiler_params(("parallel",)),
    )(y, ssum, ssq, gamma, beta)


# ----------------------------------------------------------------------------
# Plain-JAX glue: im2col, parameter construction, layer orchestration
# ----------------------------------------------------------------------------
def im2col(x_nhwc, k, s, p):
    """Extract kxk patches (stride s, pad p) -> (N*Ho*Wo, k*k*C)."""
    N, H, W, C = x_nhwc.shape
    xp = jnp.pad(x_nhwc, ((0, 0), (p, p), (p, p), (0, 0)))
    Ho = (H + 2 * p - k) // s + 1
    Wo = (W + 2 * p - k) // s + 1
    cols = []
    for i in range(k):
        for j in range(k):
            cols.append(
                xp[:, i:i + s * (Ho - 1) + 1:s, j:j + s * (Wo - 1) + 1:s, :]
            )  # (N, Ho, Wo, C)
    patches = jnp.concatenate(cols, axis=-1)  # ordering: (kh, kw, Cin)
    return patches.reshape(N * Ho * Wo, k * k * C), N, Ho, Wo


def init_params(key, input_c, num_filters=64, n_down=3):
    """PyTorch-default-style init; weight reshape/pad/cast hoisted here."""
    cfgs = [(input_c, num_filters, 2, False, True)]                  # first layer
    for i in range(n_down):
        cfgs.append((num_filters * 2 ** i, num_filters * 2 ** (i + 1),
                     1 if i == n_down - 1 else 2, True, True))       # norm layers
    cfgs.append((num_filters * 2 ** n_down, 1, 1, False, False))     # head

    params, static = [], []
    for (cin, cout, s, norm, act) in cfgs:
        key, kw, kb = jax.random.split(key, 3)
        fan_in = cin * 16
        bound = 1.0 / float(fan_in) ** 0.5
        w = jax.random.uniform(kw, (cout, cin, 4, 4), jnp.float32, -bound, bound)

        K = 16 * cin
        K_pad = _round_up(K, _LANE)
        C_pad = _round_up(cout, _LANE)
        # (Cout,Cin,kh,kw) -> (kh,kw,Cin,Cout) -> (K, Cout) -> padded bf16
        wmat = jnp.transpose(w, (2, 3, 1, 0)).reshape(K, cout)
        wmat = jnp.pad(wmat, ((0, K_pad - K), (0, C_pad - cout)))
        wmat = wmat.astype(jnp.bfloat16)

        layer = dict(w=wmat, b=None, gamma=None, beta=None)
        if norm:
            gamma = jnp.ones((1, cout), jnp.float32)
            beta = jnp.zeros((1, cout), jnp.float32)
            layer["gamma"] = jnp.pad(gamma, ((0, 0), (0, C_pad - cout)))
            layer["beta"] = jnp.pad(beta, ((0, 0), (0, C_pad - cout)))
        else:
            b = jax.random.uniform(kb, (cout,), jnp.float32, -bound, bound)
            layer["b"] = jnp.pad(b, (0, C_pad - cout)).reshape(1, C_pad)
        params.append(layer)
        static.append((s, norm, act, cout))
    return params, tuple(static)


@functools.partial(jax.jit, static_argnums=(2,))
def patch_discriminator_forward(x_nchw, params, cfg):
    """Forward pass matching PatchDiscriminator.forward (train-mode BN)."""
    x = jnp.transpose(x_nchw, (0, 2, 3, 1)).astype(jnp.float32)  # -> NHWC
    for layer, (s, norm, act, cout) in zip(params, cfg):
        a, N, Ho, Wo = im2col(x.astype(jnp.bfloat16), 4, s, 1)
        M, K = a.shape
        K_pad, C_pad = layer["w"].shape
        tile_m = _TILE_M if M >= _TILE_M else _round_up(M, 16)
        M_pad = _round_up(M, tile_m)
        a = jnp.pad(a, ((0, M_pad - M), (0, K_pad - K)))          # zero pad M, K

        if norm:
            y, ssum, ssq = conv_stats(a, layer["w"], tile_m)
            y = bn_lrelu(y, ssum, ssq, layer["gamma"], layer["beta"], tile_m, M)
        else:
            y = conv_bias_act(a, layer["w"], layer["b"], tile_m, act)

        x = y[:M, :cout].reshape(N, Ho, Wo, cout)                 # drop padding
    return jnp.transpose(x, (0, 3, 1, 2))                         # -> NCHW


# ----------------------------------------------------------------------------
if __name__ == "__main__":
    key = jax.random.PRNGKey(0)
    k_param, k_input = jax.random.split(key)

    # Small but valid config: input_c=3, num_filters=8, n_down=3, 32x32 images.
    # Channels per layer: 3 -> 8 -> 16 -> 32 -> 64 -> 1
    # Spatial:            32 -> 16 -> 8 -> 4 -> 3 -> 2   => output (2, 1, 2, 2)
    input_c, num_filters, n_down = 3, 8, 3
    x = jax.random.normal(k_input, (2, input_c, 32, 32), jnp.float32)

    params, cfg = init_params(k_param, input_c, num_filters, n_down)
    out = patch_discriminator_forward(x, params, cfg)
    out = jax.block_until_ready(out)

    assert out.shape == (2, 1, 2, 2), out.shape
    assert jnp.all(jnp.isfinite(out))
    print("KERNEL_OK")
</pallas_src>

<mosaic_0001>
module attributes {stable_mosaic.version = 11 : i64} {
  func.func @_conv_bias_act_kernel(%arg0: i32, %arg1: memref<256x128xbf16, #tpu.memory_space<vmem>>, %arg2: memref<128x128xbf16, #tpu.memory_space<vmem>>, %arg3: memref<1x128xf32, #tpu.memory_space<vmem>>, %arg4: memref<256x128xf32, #tpu.memory_space<vmem>>) attributes {dimension_semantics = [#tpu.dimension_semantics<parallel>], iteration_bounds = array<i64: 2>, scalar_prefetch = 0 : i64, scratch_operands = 0 : i64, tpu.core_type = #tpu.core_type<tc>, window_params = [{transform_indices = @transform_0, window_bounds = array<i64: 256, 128>}, {pipeline_mode = #tpu.pipeline_mode<synchronous>, transform_indices = @transform_1, window_bounds = array<i64: 128, 128>}, {pipeline_mode = #tpu.pipeline_mode<synchronous>, transform_indices = @transform_2, window_bounds = array<i64: 1, 128>}, {transform_indices = @transform_3, window_bounds = array<i64: 256, 128>}]} {
    %c0 = arith.constant 0 : index
    %c0_0 = arith.constant 0 : index
    %0 = vector.load %arg1[%c0, %c0_0] : memref<256x128xbf16, #tpu.memory_space<vmem>>, vector<256x128xbf16>
    %c0_1 = arith.constant 0 : index
    %c0_2 = arith.constant 0 : index
    %1 = vector.load %arg2[%c0_1, %c0_2] : memref<128x128xbf16, #tpu.memory_space<vmem>>, vector<128x128xbf16>
    %cst = arith.constant dense<0.000000e+00> : vector<256x128xf32>
    %2 = tpu.matmul %0, %1, %cst {dimension_numbers = #tpu.dot_dimension_numbers<[1], [0], [0], [1], [0, 0, 1, 1], [], []>} : vector<256x128xbf16>, vector<128x128xbf16>, vector<256x128xf32> -> vector<256x128xf32>
    %c0_3 = arith.constant 0 : index
    %c0_4 = arith.constant 0 : index
    %3 = vector.load %arg3[%c0_3, %c0_4] : memref<1x128xf32, #tpu.memory_space<vmem>>, vector<1x128xf32>
    %4 = vector.broadcast %3 : vector<1x128xf32> to vector<256x128xf32>
    %5 = arith.addf %2, %4 : vector<256x128xf32>
    %cst_5 = arith.constant 0.000000e+00 : f32
    %6 = vector.broadcast %cst_5 : f32 to vector<256x128xf32>
    %7 = arith.cmpf ogt, %5, %6 : vector<256x128xf32>
    %cst_6 = arith.constant 2.000000e-01 : f32
    %8 = vector.broadcast %cst_6 : f32 to vector<256x128xf32>
    %9 = arith.mulf %8, %5 : vector<256x128xf32>
    %10 = arith.select %7, %5, %9 : vector<256x128xi1>, vector<256x128xf32>
    %c0_7 = arith.constant 0 : index
    %c0_8 = arith.constant 0 : index
    %11 = vector.load %arg4[%c0_7, %c0_8] : memref<256x128xf32, #tpu.memory_space<vmem>>, vector<256x128xf32>
    tpu.vector_store %arg4[%c0_7, %c0_8], %10 {strides = array<i32>} : memref<256x128xf32, #tpu.memory_space<vmem>>, vector<256x128xf32>,
    return
  }
  func.func @transform_0(%arg0: i32) -> (i32, i32) {
    %c0_i32 = arith.constant 0 : i32
    %c0_i32_0 = arith.constant 0 : i32
    return %arg0, %c0_i32 : i32, i32
  }
  func.func @transform_1(%arg0: i32) -> (i32, i32) {
    %c0_i32 = arith.constant 0 : i32
    %c0_i32_0 = arith.constant 0 : i32
    %c0_i32_1 = arith.constant 0 : i32
    return %c0_i32, %c0_i32_0 : i32, i32
  }
  func.func @transform_2(%arg0: i32) -> (i32, i32) {
    %c0_i32 = arith.constant 0 : i32
    %c0_i32_0 = arith.constant 0 : i32
    %c0_i32_1 = arith.constant 0 : i32
    return %c0_i32, %c0_i32_0 : i32, i32
  }
  func.func @transform_3(%arg0: i32) -> (i32, i32) {
    %c0_i32 = arith.constant 0 : i32
    %c0_i32_0 = arith.constant 0 : i32
    return %arg0, %c0_i32 : i32, i32
  }
}

module attributes {stable_mosaic.version = 11 : i64} {
  func.func @_bn_lrelu_kernel(%arg0: i32, %arg1: memref<128x128xf32, #tpu.memory_space<vmem>>, %arg2: memref<1x128xf32, #tpu.memory_space<vmem>>, %arg3: memref<1x128xf32, #tpu.memory_space<vmem>>, %arg4: memref<1x128xf32, #tpu.memory_space<vmem>>, %arg5: memref<1x128xf32, #tpu.memory_space<vmem>>, %arg6: memref<128x128xf32, #tpu.memory_space<vmem>>) attributes {dimension_semantics = [#tpu.dimension_semantics<parallel>], iteration_bounds = array<i64: 1>, scalar_prefetch = 0 : i64, scratch_operands = 0 : i64, tpu.core_type = #tpu.core_type<tc>, window_params = [{transform_indices = @transform_0, window_bounds = array<i64: 128, 128>}, {pipeline_mode = #tpu.pipeline_mode<synchronous>, transform_indices = @transform_1, window_bounds = array<i64: 1, 128>}, {pipeline_mode = #tpu.pipeline_mode<synchronous>, transform_indices = @transform_2, window_bounds = array<i64: 1, 128>}, {pipeline_mode = #tpu.pipeline_mode<synchronous>, transform_indices = @transform_3, window_bounds = array<i64: 1, 128>}, {pipeline_mode = #tpu.pipeline_mode<synchronous>, transform_indices = @transform_4, window_bounds = array<i64: 1, 128>}, {transform_indices = @transform_5, window_bounds = array<i64: 128, 128>}]} {
    %c0 = arith.constant 0 : index
    %c0_0 = arith.constant 0 : index
    %0 = vector.load %arg1[%c0, %c0_0] : memref<128x128xf32, #tpu.memory_space<vmem>>, vector<128x128xf32>
    %c0_1 = arith.constant 0 : index
    %c0_2 = arith.constant 0 : index
    %1 = vector.load %arg2[%c0_1, %c0_2] : memref<1x128xf32, #tpu.memory_space<vmem>>, vector<1x128xf32>
    %cst = arith.constant 7.812500e-03 : f32
    %2 = vector.broadcast %cst : f32 to vector<1x128xf32>
    %3 = arith.mulf %1, %2 : vector<1x128xf32>
    %c0_3 = arith.constant 0 : index
    %c0_4 = arith.constant 0 : index
    %4 = vector.load %arg3[%c0_3, %c0_4] : memref<1x128xf32, #tpu.memory_space<vmem>>, vector<1x128xf32>
    %cst_5 = arith.constant 7.812500e-03 : f32
    %5 = vector.broadcast %cst_5 : f32 to vector<1x128xf32>
    %6 = arith.mulf %4, %5 : vector<1x128xf32>
    %7 = arith.mulf %3, %3 : vector<1x128xf32>
    %8 = arith.subf %6, %7 : vector<1x128xf32>
    %cst_6 = arith.constant 0.000000e+00 : f32
    %9 = vector.broadcast %cst_6 : f32 to vector<1x128xf32>
    %10 = arith.maximumf %8, %9 : vector<1x128xf32>
    %c0_7 = arith.constant 0 : index
    %c0_8 = arith.constant 0 : index
    %11 = vector.load %arg4[%c0_7, %c0_8] : memref<1x128xf32, #tpu.memory_space<vmem>>, vector<1x128xf32>
    %cst_9 = arith.constant 9.99999974E-6 : f32
    %12 = vector.broadcast %cst_9 : f32 to vector<1x128xf32>
    %13 = arith.addf %10, %12 : vector<1x128xf32>
    %14 = math.rsqrt %13 : vector<1x128xf32>
    %15 = arith.mulf %11, %14 : vector<1x128xf32>
    %c0_10 = arith.constant 0 : index
    %c0_11 = arith.constant 0 : index
    %16 = vector.load %arg5[%c0_10, %c0_11] : memref<1x128xf32, #tpu.memory_space<vmem>>, vector<1x128xf32>
    %17 = arith.mulf %3, %15 : vector<1x128xf32>
    %18 = arith.subf %16, %17 : vector<1x128xf32>
    %19 = vector.broadcast %15 : vector<1x128xf32> to vector<128x128xf32>
    %20 = arith.mulf %0, %19 : vector<128x128xf32>
    %21 = vector.broadcast %18 : vector<1x128xf32> to vector<128x128xf32>
    %22 = arith.addf %20, %21 : vector<128x128xf32>
    %cst_12 = arith.constant 0.000000e+00 : f32
    %23 = vector.broadcast %cst_12 : f32 to vector<128x128xf32>
    %24 = arith.cmpf ogt, %22, %23 : vector<128x128xf32>
    %cst_13 = arith.constant 2.000000e-01 : f32
    %25 = vector.broadcast %cst_13 : f32 to vector<128x128xf32>
    %26 = arith.mulf %25, %22 : vector<128x128xf32>
    %27 = arith.select %24, %22, %26 : vector<128x128xi1>, vector<128x128xf32>
    %c0_14 = arith.constant 0 : index
    %c0_15 = arith.constant 0 : index
    %28 = vector.load %arg6[%c0_14, %c0_15] : memref<128x128xf32, #tpu.memory_space<vmem>>, vector<128x128xf32>
    tpu.vector_store %arg6[%c0_14, %c0_15], %27 {strides = array<i32>} : memref<128x128xf32, #tpu.memory_space<vmem>>, vector<128x128xf32>,
    return
  }
  func.func @transform_0(%arg0: i32) -> (i32, i32) {
    %c0_i32 = arith.constant 0 : i32
    %c0_i32_0 = arith.constant 0 : i32
    return %arg0, %c0_i32 : i32, i32
  }
  func.func @transform_1(%arg0: i32) -> (i32, i32) {
    %c0_i32 = arith.constant 0 : i32
    %c0_i32_0 = arith.constant 0 : i32
    %c0_i32_1 = arith.constant 0 : i32
    return %c0_i32, %c0_i32_0 : i32, i32
  }
  func.func @transform_2(%arg0: i32) -> (i32, i32) {
    %c0_i32 = arith.constant 0 : i32
    %c0_i32_0 = arith.constant 0 : i32
    %c0_i32_1 = arith.constant 0 : i32
    return %c0_i32, %c0_i32_0 : i32, i32
  }
  func.func @transform_3(%arg0: i32) -> (i32, i32) {
    %c0_i32 = arith.constant 0 : i32
    %c0_i32_0 = arith.constant 0 : i32
    %c0_i32_1 = arith.constant 0 : i32
    return %c0_i32, %c0_i32_0 : i32, i32
  }
  func.func @transform_4(%arg0: i32) -> (i32, i32) {
    %c0_i32 = arith.constant 0 : i32
    %c0_i32_0 = arith.constant 0 : i32
    %c0_i32_1 = arith.constant 0 : i32
    return %c0_i32, %c0_i32_0 : i32, i32
  }
  func.func @transform_5(%arg0: i32) -> (i32, i32) {
    %c0_i32 = arith.constant 0 : i32
    %c0_i32_0 = arith.constant 0 : i32
    return %arg0, %c0_i32 : i32, i32
  }
}

module attributes {stable_mosaic.version = 11 : i64} {
  func.func @_conv_stats_kernel(%arg0: i32, %arg1: memref<128x128xbf16, #tpu.memory_space<vmem>>, %arg2: memref<128x128xbf16, #tpu.memory_space<vmem>>, %arg3: memref<128x128xf32, #tpu.memory_space<vmem>>, %arg4: memref<1x128xf32, #tpu.memory_space<vmem>>, %arg5: memref<1x128xf32, #tpu.memory_space<vmem>>) attributes {dimension_semantics = [#tpu.dimension_semantics<arbitrary>], iteration_bounds = array<i64: 1>, scalar_prefetch = 0 : i64, scratch_operands = 0 : i64, tpu.core_type = #tpu.core_type<tc>, window_params = [{transform_indices = @transform_0, window_bounds = array<i64: 128, 128>}, {pipeline_mode = #tpu.pipeline_mode<synchronous>, transform_indices = @transform_1, window_bounds = array<i64: 128, 128>}, {transform_indices = @transform_2, window_bounds = array<i64: 128, 128>}, {pipeline_mode = #tpu.pipeline_mode<synchronous>, transform_indices = @transform_3, window_bounds = array<i64: 1, 128>}, {pipeline_mode = #tpu.pipeline_mode<synchronous>, transform_indices = @transform_4, window_bounds = array<i64: 1, 128>}]} {
    %c0_i32 = arith.constant 0 : i32
    %0 = arith.cmpi eq, %arg0, %c0_i32 : i32
    %1 = arith.extui %0 : i1 to i32
    %c0_i32_0 = arith.constant 0 : i32
    %2 = arith.cmpi ne, %1, %c0_i32_0 : i32
    scf.if %2 {
      %cst_16 = arith.constant 0.000000e+00 : f32
      %18 = vector.broadcast %cst_16 : f32 to vector<1x128xf32>
      %c0_17 = arith.constant 0 : index
      %c0_18 = arith.constant 0 : index
      %19 = vector.load %arg4[%c0_17, %c0_18] : memref<1x128xf32, #tpu.memory_space<vmem>>, vector<1x128xf32>
      tpu.vector_store %arg4[%c0_17, %c0_18], %18 {strides = array<i32>} : memref<1x128xf32, #tpu.memory_space<vmem>>, vector<1x128xf32>,
      %cst_19 = arith.constant 0.000000e+00 : f32
      %20 = vector.broadcast %cst_19 : f32 to vector<1x128xf32>
      %c0_20 = arith.constant 0 : index
      %c0_21 = arith.constant 0 : index
      %21 = vector.load %arg5[%c0_20, %c0_21] : memref<1x128xf32, #tpu.memory_space<vmem>>, vector<1x128xf32>
      tpu.vector_store %arg5[%c0_20, %c0_21], %20 {strides = array<i32>} : memref<1x128xf32, #tpu.memory_space<vmem>>, vector<1x128xf32>,
    } else {
    }
    %c0 = arith.constant 0 : index
    %c0_1 = arith.constant 0 : index
    %3 = vector.load %arg1[%c0, %c0_1] : memref<128x128xbf16, #tpu.memory_space<vmem>>, vector<128x128xbf16>
    %c0_2 = arith.constant 0 : index
    %c0_3 = arith.constant 0 : index
    %4 = vector.load %arg2[%c0_2, %c0_3] : memref<128x128xbf16, #tpu.memory_space<vmem>>, vector<128x128xbf16>
    %cst = arith.constant dense<0.000000e+00> : vector<128x128xf32>
    %5 = tpu.matmul %3, %4, %cst {dimension_numbers = #tpu.dot_dimension_numbers<[1], [0], [0], [1], [0, 0, 1, 1], [], []>} : vector<128x128xbf16>, vector<128x128xbf16>, vector<128x128xf32> -> vector<128x128xf32>
    %c0_4 = arith.constant 0 : index
    %c0_5 = arith.constant 0 : index
    %6 = vector.load %arg3[%c0_4, %c0_5] : memref<128x128xf32, #tpu.memory_space<vmem>>, vector<128x128xf32>
    tpu.vector_store %arg3[%c0_4, %c0_5], %5 {strides = array<i32>} : memref<128x128xf32, #tpu.memory_space<vmem>>, vector<128x128xf32>,
    %c0_6 = arith.constant 0 : index
    %c0_7 = arith.constant 0 : index
    %7 = vector.load %arg4[%c0_6, %c0_7] : memref<1x128xf32, #tpu.memory_space<vmem>>, vector<1x128xf32>
    %cst_8 = arith.constant dense<0.000000e+00> : vector<128xf32>
    %8 = vector.multi_reduction <add>, %5, %cst_8 [0] : vector<128x128xf32> to vector<128xf32>
    %9 = vector.shape_cast %8 : vector<128xf32> to vector<1x128xf32>
    %10 = arith.addf %7, %9 : vector<1x128xf32>
    %c0_9 = arith.constant 0 : index
    %c0_10 = arith.constant 0 : index
    %11 = vector.load %arg4[%c0_9, %c0_10] : memref<1x128xf32, #tpu.memory_space<vmem>>, vector<1x128xf32>
    tpu.vector_store %arg4[%c0_9, %c0_10], %10 {strides = array<i32>} : memref<1x128xf32, #tpu.memory_space<vmem>>, vector<1x128xf32>,
    %c0_11 = arith.constant 0 : index
    %c0_12 = arith.constant 0 : index
    %12 = vector.load %arg5[%c0_11, %c0_12] : memref<1x128xf32, #tpu.memory_space<vmem>>, vector<1x128xf32>
    %13 = arith.mulf %5, %5 : vector<128x128xf32>
    %cst_13 = arith.constant dense<0.000000e+00> : vector<128xf32>
    %14 = vector.multi_reduction <add>, %13, %cst_13 [0] : vector<128x128xf32> to vector<128xf32>
    %15 = vector.shape_cast %14 : vector<128xf32> to vector<1x128xf32>
    %16 = arith.addf %12, %15 : vector<1x128xf32>
    %c0_14 = arith.constant 0 : index
    %c0_15 = arith.constant 0 : index
    %17 = vector.load %arg5[%c0_14, %c0_15] : memref<1x128xf32, #tpu.memory_space<vmem>>, vector<1x128xf32>
    tpu.vector_store %arg5[%c0_14, %c0_15], %16 {strides = array<i32>} : memref<1x128xf32, #tpu.memory_space<vmem>>, vector<1x128xf32>,
    return
  }
  func.func @transform_0(%arg0: i32) -> (i32, i32) {
    %c0_i32 = arith.constant 0 : i32
    %c0_i32_0 = arith.constant 0 : i32
    return %arg0, %c0_i32 : i32, i32
  }
  func.func @transform_1(%arg0: i32) -> (i32, i32) {
    %c0_i32 = arith.constant 0 : i32
    %c0_i32_0 = arith.constant 0 : i32
    %c0_i32_1 = arith.constant 0 : i32
    return %c0_i32, %c0_i32_0 : i32, i32
  }
  func.func @transform_2(%arg0: i32) -> (i32, i32) {
    %c0_i32 = arith.constant 0 : i32
    %c0_i32_0 = arith.constant 0 : i32
    return %arg0, %c0_i32 : i32, i32
  }
  func.func @transform_3(%arg0: i32) -> (i32, i32) {
    %c0_i32 = arith.constant 0 : i32
    %c0_i32_0 = arith.constant 0 : i32
    %c0_i32_1 = arith.constant 0 : i32
    return %c0_i32, %c0_i32_0 : i32, i32
  }
  func.func @transform_4(%arg0: i32) -> (i32, i32) {
    %c0_i32 = arith.constant 0 : i32
    %c0_i32_0 = arith.constant 0 : i32
    %c0_i32_1 = arith.constant 0 : i32
    return %c0_i32, %c0_i32_0 : i32, i32
  }
}

module attributes {stable_mosaic.version = 11 : i64} {
  func.func @_bn_lrelu_kernel(%arg0: i32, %arg1: memref<32x128xf32, #tpu.memory_space<vmem>>, %arg2: memref<1x128xf32, #tpu.memory_space<vmem>>, %arg3: memref<1x128xf32, #tpu.memory_space<vmem>>, %arg4: memref<1x128xf32, #tpu.memory_space<vmem>>, %arg5: memref<1x128xf32, #tpu.memory_space<vmem>>, %arg6: memref<32x128xf32, #tpu.memory_space<vmem>>) attributes {dimension_semantics = [#tpu.dimension_semantics<parallel>], iteration_bounds = array<i64: 1>, scalar_prefetch = 0 : i64, scratch_operands = 0 : i64, tpu.core_type = #tpu.core_type<tc>, window_params = [{transform_indices = @transform_0, window_bounds = array<i64: 32, 128>}, {pipeline_mode = #tpu.pipeline_mode<synchronous>, transform_indices = @transform_1, window_bounds = array<i64: 1, 128>}, {pipeline_mode = #tpu.pipeline_mode<synchronous>, transform_indices = @transform_2, window_bounds = array<i64: 1, 128>}, {pipeline_mode = #tpu.pipeline_mode<synchronous>, transform_indices = @transform_3, window_bounds = array<i64: 1, 128>}, {pipeline_mode = #tpu.pipeline_mode<synchronous>, transform_indices = @transform_4, window_bounds = array<i64: 1, 128>}, {transform_indices = @transform_5, window_bounds = array<i64: 32, 128>}]} {
    %c0 = arith.constant 0 : index
    %c0_0 = arith.constant 0 : index
    %0 = vector.load %arg1[%c0, %c0_0] : memref<32x128xf32, #tpu.memory_space<vmem>>, vector<32x128xf32>
    %c0_1 = arith.constant 0 : index
    %c0_2 = arith.constant 0 : index
    %1 = vector.load %arg2[%c0_1, %c0_2] : memref<1x128xf32, #tpu.memory_space<vmem>>, vector<1x128xf32>
    %cst = arith.constant 3.125000e-02 : f32
    %2 = vector.broadcast %cst : f32 to vector<1x128xf32>
    %3 = arith.mulf %1, %2 : vector<1x128xf32>
    %c0_3 = arith.constant 0 : index
    %c0_4 = arith.constant 0 : index
    %4 = vector.load %arg3[%c0_3, %c0_4] : memref<1x128xf32, #tpu.memory_space<vmem>>, vector<1x128xf32>
    %cst_5 = arith.constant 3.125000e-02 : f32
    %5 = vector.broadcast %cst_5 : f32 to vector<1x128xf32>
    %6 = arith.mulf %4, %5 : vector<1x128xf32>
    %7 = arith.mulf %3, %3 : vector<1x128xf32>
    %8 = arith.subf %6, %7 : vector<1x128xf32>
    %cst_6 = arith.constant 0.000000e+00 : f32
    %9 = vector.broadcast %cst_6 : f32 to vector<1x128xf32>
    %10 = arith.maximumf %8, %9 : vector<1x128xf32>
    %c0_7 = arith.constant 0 : index
    %c0_8 = arith.constant 0 : index
    %11 = vector.load %arg4[%c0_7, %c0_8] : memref<1x128xf32, #tpu.memory_space<vmem>>, vector<1x128xf32>
    %cst_9 = arith.constant 9.99999974E-6 : f32
    %12 = vector.broadcast %cst_9 : f32 to vector<1x128xf32>
    %13 = arith.addf %10, %12 : vector<1x128xf32>
    %14 = math.rsqrt %13 : vector<1x128xf32>
    %15 = arith.mulf %11, %14 : vector<1x128xf32>
    %c0_10 = arith.constant 0 : index
    %c0_11 = arith.constant 0 : index
    %16 = vector.load %arg5[%c0_10, %c0_11] : memref<1x128xf32, #tpu.memory_space<vmem>>, vector<1x128xf32>
    %17 = arith.mulf %3, %15 : vector<1x128xf32>
    %18 = arith.subf %16, %17 : vector<1x128xf32>
    %19 = vector.broadcast %15 : vector<1x128xf32> to vector<32x128xf32>
    %20 = arith.mulf %0, %19 : vector<32x128xf32>
    %21 = vector.broadcast %18 : vector<1x128xf32> to vector<32x128xf32>
    %22 = arith.addf %20, %21 : vector<32x128xf32>
    %cst_12 = arith.constant 0.000000e+00 : f32
    %23 = vector.broadcast %cst_12 : f32 to vector<32x128xf32>
    %24 = arith.cmpf ogt, %22, %23 : vector<32x128xf32>
    %cst_13 = arith.constant 2.000000e-01 : f32
    %25 = vector.broadcast %cst_13 : f32 to vector<32x128xf32>
    %26 = arith.mulf %25, %22 : vector<32x128xf32>
    %27 = arith.select %24, %22, %26 : vector<32x128xi1>, vector<32x128xf32>
    %c0_14 = arith.constant 0 : index
    %c0_15 = arith.constant 0 : index
    %28 = vector.load %arg6[%c0_14, %c0_15] : memref<32x128xf32, #tpu.memory_space<vmem>>, vector<32x128xf32>
    tpu.vector_store %arg6[%c0_14, %c0_15], %27 {strides = array<i32>} : memref<32x128xf32, #tpu.memory_space<vmem>>, vector<32x128xf32>,
    return
  }
  func.func @transform_0(%arg0: i32) -> (i32, i32) {
    %c0_i32 = arith.constant 0 : i32
    %c0_i32_0 = arith.constant 0 : i32
    return %arg0, %c0_i32 : i32, i32
  }
  func.func @transform_1(%arg0: i32) -> (i32, i32) {
    %c0_i32 = arith.constant 0 : i32
    %c0_i32_0 = arith.constant 0 : i32
    %c0_i32_1 = arith.constant 0 : i32
    return %c0_i32, %c0_i32_0 : i32, i32
  }
  func.func @transform_2(%arg0: i32) -> (i32, i32) {
    %c0_i32 = arith.constant 0 : i32
    %c0_i32_0 = arith.constant 0 : i32
    %c0_i32_1 = arith.constant 0 : i32
    return %c0_i32, %c0_i32_0 : i32, i32
  }
  func.func @transform_3(%arg0: i32) -> (i32, i32) {
    %c0_i32 = arith.constant 0 : i32
    %c0_i32_0 = arith.constant 0 : i32
    %c0_i32_1 = arith.constant 0 : i32
    return %c0_i32, %c0_i32_0 : i32, i32
  }
  func.func @transform_4(%arg0: i32) -> (i32, i32) {
    %c0_i32 = arith.constant 0 : i32
    %c0_i32_0 = arith.constant 0 : i32
    %c0_i32_1 = arith.constant 0 : i32
    return %c0_i32, %c0_i32_0 : i32, i32
  }
  func.func @transform_5(%arg0: i32) -> (i32, i32) {
    %c0_i32 = arith.constant 0 : i32
    %c0_i32_0 = arith.constant 0 : i32
    return %arg0, %c0_i32 : i32, i32
  }
}

module attributes {stable_mosaic.version = 11 : i64} {
  func.func @_conv_stats_kernel(%arg0: i32, %arg1: memref<32x256xbf16, #tpu.memory_space<vmem>>, %arg2: memref<256x128xbf16, #tpu.memory_space<vmem>>, %arg3: memref<32x128xf32, #tpu.memory_space<vmem>>, %arg4: memref<1x128xf32, #tpu.memory_space<vmem>>, %arg5: memref<1x128xf32, #tpu.memory_space<vmem>>) attributes {dimension_semantics = [#tpu.dimension_semantics<arbitrary>], iteration_bounds = array<i64: 1>, scalar_prefetch = 0 : i64, scratch_operands = 0 : i64, tpu.core_type = #tpu.core_type<tc>, window_params = [{transform_indices = @transform_0, window_bounds = array<i64: 32, 256>}, {pipeline_mode = #tpu.pipeline_mode<synchronous>, transform_indices = @transform_1, window_bounds = array<i64: 256, 128>}, {transform_indices = @transform_2, window_bounds = array<i64: 32, 128>}, {pipeline_mode = #tpu.pipeline_mode<synchronous>, transform_indices = @transform_3, window_bounds = array<i64: 1, 128>}, {pipeline_mode = #tpu.pipeline_mode<synchronous>, transform_indices = @transform_4, window_bounds = array<i64: 1, 128>}]} {
    %c0_i32 = arith.constant 0 : i32
    %0 = arith.cmpi eq, %arg0, %c0_i32 : i32
    %1 = arith.extui %0 : i1 to i32
    %c0_i32_0 = arith.constant 0 : i32
    %2 = arith.cmpi ne, %1, %c0_i32_0 : i32
    scf.if %2 {
      %cst_16 = arith.constant 0.000000e+00 : f32
      %18 = vector.broadcast %cst_16 : f32 to vector<1x128xf32>
      %c0_17 = arith.constant 0 : index
      %c0_18 = arith.constant 0 : index
      %19 = vector.load %arg4[%c0_17, %c0_18] : memref<1x128xf32, #tpu.memory_space<vmem>>, vector<1x128xf32>
      tpu.vector_store %arg4[%c0_17, %c0_18], %18 {strides = array<i32>} : memref<1x128xf32, #tpu.memory_space<vmem>>, vector<1x128xf32>,
      %cst_19 = arith.constant 0.000000e+00 : f32
      %20 = vector.broadcast %cst_19 : f32 to vector<1x128xf32>
      %c0_20 = arith.constant 0 : index
      %c0_21 = arith.constant 0 : index
      %21 = vector.load %arg5[%c0_20, %c0_21] : memref<1x128xf32, #tpu.memory_space<vmem>>, vector<1x128xf32>
      tpu.vector_store %arg5[%c0_20, %c0_21], %20 {strides = array<i32>} : memref<1x128xf32, #tpu.memory_space<vmem>>, vector<1x128xf32>,
    } else {
    }
    %c0 = arith.constant 0 : index
    %c0_1 = arith.constant 0 : index
    %3 = vector.load %arg1[%c0, %c0_1] : memref<32x256xbf16, #tpu.memory_space<vmem>>, vector<32x256xbf16>
    %c0_2 = arith.constant 0 : index
    %c0_3 = arith.constant 0 : index
    %4 = vector.load %arg2[%c0_2, %c0_3] : memref<256x128xbf16, #tpu.memory_space<vmem>>, vector<256x128xbf16>
    %cst = arith.constant dense<0.000000e+00> : vector<32x128xf32>
    %5 = tpu.matmul %3, %4, %cst {dimension_numbers = #tpu.dot_dimension_numbers<[1], [0], [0], [1], [0, 0, 1, 1], [], []>} : vector<32x256xbf16>, vector<256x128xbf16>, vector<32x128xf32> -> vector<32x128xf32>
    %c0_4 = arith.constant 0 : index
    %c0_5 = arith.constant 0 : index
    %6 = vector.load %arg3[%c0_4, %c0_5] : memref<32x128xf32, #tpu.memory_space<vmem>>, vector<32x128xf32>
    tpu.vector_store %arg3[%c0_4, %c0_5], %5 {strides = array<i32>} : memref<32x128xf32, #tpu.memory_space<vmem>>, vector<32x128xf32>,
    %c0_6 = arith.constant 0 : index
    %c0_7 = arith.constant 0 : index
    %7 = vector.load %arg4[%c0_6, %c0_7] : memref<1x128xf32, #tpu.memory_space<vmem>>, vector<1x128xf32>
    %cst_8 = arith.constant dense<0.000000e+00> : vector<128xf32>
    %8 = vector.multi_reduction <add>, %5, %cst_8 [0] : vector<32x128xf32> to vector<128xf32>
    %9 = vector.shape_cast %8 : vector<128xf32> to vector<1x128xf32>
    %10 = arith.addf %7, %9 : vector<1x128xf32>
    %c0_9 = arith.constant 0 : index
    %c0_10 = arith.constant 0 : index
    %11 = vector.load %arg4[%c0_9, %c0_10] : memref<1x128xf32, #tpu.memory_space<vmem>>, vector<1x128xf32>
    tpu.vector_store %arg4[%c0_9, %c0_10], %10 {strides = array<i32>} : memref<1x128xf32, #tpu.memory_space<vmem>>, vector<1x128xf32>,
    %c0_11 = arith.constant 0 : index
    %c0_12 = arith.constant 0 : index
    %12 = vector.load %arg5[%c0_11, %c0_12] : memref<1x128xf32, #tpu.memory_space<vmem>>, vector<1x128xf32>
    %13 = arith.mulf %5, %5 : vector<32x128xf32>
    %cst_13 = arith.constant dense<0.000000e+00> : vector<128xf32>
    %14 = vector.multi_reduction <add>, %13, %cst_13 [0] : vector<32x128xf32> to vector<128xf32>
    %15 = vector.shape_cast %14 : vector<128xf32> to vector<1x128xf32>
    %16 = arith.addf %12, %15 : vector<1x128xf32>
    %c0_14 = arith.constant 0 : index
    %c0_15 = arith.constant 0 : index
    %17 = vector.load %arg5[%c0_14, %c0_15] : memref<1x128xf32, #tpu.memory_space<vmem>>, vector<1x128xf32>
    tpu.vector_store %arg5[%c0_14, %c0_15], %16 {strides = array<i32>} : memref<1x128xf32, #tpu.memory_space<vmem>>, vector<1x128xf32>,
    return
  }
  func.func @transform_0(%arg0: i32) -> (i32, i32) {
    %c0_i32 = arith.constant 0 : i32
    %c0_i32_0 = arith.constant 0 : i32
    return %arg0, %c0_i32 : i32, i32
  }
  func.func @transform_1(%arg0: i32) -> (i32, i32) {
    %c0_i32 = arith.constant 0 : i32
    %c0_i32_0 = arith.constant 0 : i32
    %c0_i32_1 = arith.constant 0 : i32
    return %c0_i32, %c0_i32_0 : i32, i32
  }
  func.func @transform_2(%arg0: i32) -> (i32, i32) {
    %c0_i32 = arith.constant 0 : i32
    %c0_i32_0 = arith.constant 0 : i32
    return %arg0, %c0_i32 : i32, i32
  }
  func.func @transform_3(%arg0: i32) -> (i32, i32) {
    %c0_i32 = arith.constant 0 : i32
    %c0_i32_0 = arith.constant 0 : i32
    %c0_i32_1 = arith.constant 0 : i32
    return %c0_i32, %c0_i32_0 : i32, i32
  }
  func.func @transform_4(%arg0: i32) -> (i32, i32) {
    %c0_i32 = arith.constant 0 : i32
    %c0_i32_0 = arith.constant 0 : i32
    %c0_i32_1 = arith.constant 0 : i32
    return %c0_i32, %c0_i32_0 : i32, i32
  }
}

module attributes {stable_mosaic.version = 11 : i64} {
  func.func @_conv_stats_kernel(%arg0: i32, %arg1: memref<32x512xbf16, #tpu.memory_space<vmem>>, %arg2: memref<512x128xbf16, #tpu.memory_space<vmem>>, %arg3: memref<32x128xf32, #tpu.memory_space<vmem>>, %arg4: memref<1x128xf32, #tpu.memory_space<vmem>>, %arg5: memref<1x128xf32, #tpu.memory_space<vmem>>) attributes {dimension_semantics = [#tpu.dimension_semantics<arbitrary>], iteration_bounds = array<i64: 1>, scalar_prefetch = 0 : i64, scratch_operands = 0 : i64, tpu.core_type = #tpu.core_type<tc>, window_params = [{transform_indices = @transform_0, window_bounds = array<i64: 32, 512>}, {pipeline_mode = #tpu.pipeline_mode<synchronous>, transform_indices = @transform_1, window_bounds = array<i64: 512, 128>}, {transform_indices = @transform_2, window_bounds = array<i64: 32, 128>}, {pipeline_mode = #tpu.pipeline_mode<synchronous>, transform_indices = @transform_3, window_bounds = array<i64: 1, 128>}, {pipeline_mode = #tpu.pipeline_mode<synchronous>, transform_indices = @transform_4, window_bounds = array<i64: 1, 128>}]} {
    %c0_i32 = arith.constant 0 : i32
    %0 = arith.cmpi eq, %arg0, %c0_i32 : i32
    %1 = arith.extui %0 : i1 to i32
    %c0_i32_0 = arith.constant 0 : i32
    %2 = arith.cmpi ne, %1, %c0_i32_0 : i32
    scf.if %2 {
      %cst_16 = arith.constant 0.000000e+00 : f32
      %18 = vector.broadcast %cst_16 : f32 to vector<1x128xf32>
      %c0_17 = arith.constant 0 : index
      %c0_18 = arith.constant 0 : index
      %19 = vector.load %arg4[%c0_17, %c0_18] : memref<1x128xf32, #tpu.memory_space<vmem>>, vector<1x128xf32>
      tpu.vector_store %arg4[%c0_17, %c0_18], %18 {strides = array<i32>} : memref<1x128xf32, #tpu.memory_space<vmem>>, vector<1x128xf32>,
      %cst_19 = arith.constant 0.000000e+00 : f32
      %20 = vector.broadcast %cst_19 : f32 to vector<1x128xf32>
      %c0_20 = arith.constant 0 : index
      %c0_21 = arith.constant 0 : index
      %21 = vector.load %arg5[%c0_20, %c0_21] : memref<1x128xf32, #tpu.memory_space<vmem>>, vector<1x128xf32>
      tpu.vector_store %arg5[%c0_20, %c0_21], %20 {strides = array<i32>} : memref<1x128xf32, #tpu.memory_space<vmem>>, vector<1x128xf32>,
    } else {
    }
    %c0 = arith.constant 0 : index
    %c0_1 = arith.constant 0 : index
    %3 = vector.load %arg1[%c0, %c0_1] : memref<32x512xbf16, #tpu.memory_space<vmem>>, vector<32x512xbf16>
    %c0_2 = arith.constant 0 : index
    %c0_3 = arith.constant 0 : index
    %4 = vector.load %arg2[%c0_2, %c0_3] : memref<512x128xbf16, #tpu.memory_space<vmem>>, vector<512x128xbf16>
    %cst = arith.constant dense<0.000000e+00> : vector<32x128xf32>
    %5 = tpu.matmul %3, %4, %cst {dimension_numbers = #tpu.dot_dimension_numbers<[1], [0], [0], [1], [0, 0, 1, 1], [], []>} : vector<32x512xbf16>, vector<512x128xbf16>, vector<32x128xf32> -> vector<32x128xf32>
    %c0_4 = arith.constant 0 : index
    %c0_5 = arith.constant 0 : index
    %6 = vector.load %arg3[%c0_4, %c0_5] : memref<32x128xf32, #tpu.memory_space<vmem>>, vector<32x128xf32>
    tpu.vector_store %arg3[%c0_4, %c0_5], %5 {strides = array<i32>} : memref<32x128xf32, #tpu.memory_space<vmem>>, vector<32x128xf32>,
    %c0_6 = arith.constant 0 : index
    %c0_7 = arith.constant 0 : index
    %7 = vector.load %arg4[%c0_6, %c0_7] : memref<1x128xf32, #tpu.memory_space<vmem>>, vector<1x128xf32>
    %cst_8 = arith.constant dense<0.000000e+00> : vector<128xf32>
    %8 = vector.multi_reduction <add>, %5, %cst_8 [0] : vector<32x128xf32> to vector<128xf32>
    %9 = vector.shape_cast %8 : vector<128xf32> to vector<1x128xf32>
    %10 = arith.addf %7, %9 : vector<1x128xf32>
    %c0_9 = arith.constant 0 : index
    %c0_10 = arith.constant 0 : index
    %11 = vector.load %arg4[%c0_9, %c0_10] : memref<1x128xf32, #tpu.memory_space<vmem>>, vector<1x128xf32>
    tpu.vector_store %arg4[%c0_9, %c0_10], %10 {strides = array<i32>} : memref<1x128xf32, #tpu.memory_space<vmem>>, vector<1x128xf32>,
    %c0_11 = arith.constant 0 : index
    %c0_12 = arith.constant 0 : index
    %12 = vector.load %arg5[%c0_11, %c0_12] : memref<1x128xf32, #tpu.memory_space<vmem>>, vector<1x128xf32>
    %13 = arith.mulf %5, %5 : vector<32x128xf32>
    %cst_13 = arith.constant dense<0.000000e+00> : vector<128xf32>
    %14 = vector.multi_reduction <add>, %13, %cst_13 [0] : vector<32x128xf32> to vector<128xf32>
    %15 = vector.shape_cast %14 : vector<128xf32> to vector<1x128xf32>
    %16 = arith.addf %12, %15 : vector<1x128xf32>
    %c0_14 = arith.constant 0 : index
    %c0_15 = arith.constant 0 : index
    %17 = vector.load %arg5[%c0_14, %c0_15] : memref<1x128xf32, #tpu.memory_space<vmem>>, vector<1x128xf32>
    tpu.vector_store %arg5[%c0_14, %c0_15], %16 {strides = array<i32>} : memref<1x128xf32, #tpu.memory_space<vmem>>, vector<1x128xf32>,
    return
  }
  func.func @transform_0(%arg0: i32) -> (i32, i32) {
    %c0_i32 = arith.constant 0 : i32
    %c0_i32_0 = arith.constant 0 : i32
    return %arg0, %c0_i32 : i32, i32
  }
  func.func @transform_1(%arg0: i32) -> (i32, i32) {
    %c0_i32 = arith.constant 0 : i32
    %c0_i32_0 = arith.constant 0 : i32
    %c0_i32_1 = arith.constant 0 : i32
    return %c0_i32, %c0_i32_0 : i32, i32
  }
  func.func @transform_2(%arg0: i32) -> (i32, i32) {
    %c0_i32 = arith.constant 0 : i32
    %c0_i32_0 = arith.constant 0 : i32
    return %arg0, %c0_i32 : i32, i32
  }
  func.func @transform_3(%arg0: i32) -> (i32, i32) {
    %c0_i32 = arith.constant 0 : i32
    %c0_i32_0 = arith.constant 0 : i32
    %c0_i32_1 = arith.constant 0 : i32
    return %c0_i32, %c0_i32_0 : i32, i32
  }
  func.func @transform_4(%arg0: i32) -> (i32, i32) {
    %c0_i32 = arith.constant 0 : i32
    %c0_i32_0 = arith.constant 0 : i32
    %c0_i32_1 = arith.constant 0 : i32
    return %c0_i32, %c0_i32_0 : i32, i32
  }
}

module attributes {stable_mosaic.version = 11 : i64} {
  func.func @_bn_lrelu_kernel(%arg0: i32, %arg1: memref<32x128xf32, #tpu.memory_space<vmem>>, %arg2: memref<1x128xf32, #tpu.memory_space<vmem>>, %arg3: memref<1x128xf32, #tpu.memory_space<vmem>>, %arg4: memref<1x128xf32, #tpu.memory_space<vmem>>, %arg5: memref<1x128xf32, #tpu.memory_space<vmem>>, %arg6: memref<32x128xf32, #tpu.memory_space<vmem>>) attributes {dimension_semantics = [#tpu.dimension_semantics<parallel>], iteration_bounds = array<i64: 1>, scalar_prefetch = 0 : i64, scratch_operands = 0 : i64, tpu.core_type = #tpu.core_type<tc>, window_params = [{transform_indices = @transform_0, window_bounds = array<i64: 32, 128>}, {pipeline_mode = #tpu.pipeline_mode<synchronous>, transform_indices = @transform_1, window_bounds = array<i64: 1, 128>}, {pipeline_mode = #tpu.pipeline_mode<synchronous>, transform_indices = @transform_2, window_bounds = array<i64: 1, 128>}, {pipeline_mode = #tpu.pipeline_mode<synchronous>, transform_indices = @transform_3, window_bounds = array<i64: 1, 128>}, {pipeline_mode = #tpu.pipeline_mode<synchronous>, transform_indices = @transform_4, window_bounds = array<i64: 1, 128>}, {transform_indices = @transform_5, window_bounds = array<i64: 32, 128>}]} {
    %c0 = arith.constant 0 : index
    %c0_0 = arith.constant 0 : index
    %0 = vector.load %arg1[%c0, %c0_0] : memref<32x128xf32, #tpu.memory_space<vmem>>, vector<32x128xf32>
    %c0_1 = arith.constant 0 : index
    %c0_2 = arith.constant 0 : index
    %1 = vector.load %arg2[%c0_1, %c0_2] : memref<1x128xf32, #tpu.memory_space<vmem>>, vector<1x128xf32>
    %cst = arith.constant 0.055555556 : f32
    %2 = vector.broadcast %cst : f32 to vector<1x128xf32>
    %3 = arith.mulf %1, %2 : vector<1x128xf32>
    %c0_3 = arith.constant 0 : index
    %c0_4 = arith.constant 0 : index
    %4 = vector.load %arg3[%c0_3, %c0_4] : memref<1x128xf32, #tpu.memory_space<vmem>>, vector<1x128xf32>
    %cst_5 = arith.constant 0.055555556 : f32
    %5 = vector.broadcast %cst_5 : f32 to vector<1x128xf32>
    %6 = arith.mulf %4, %5 : vector<1x128xf32>
    %7 = arith.mulf %3, %3 : vector<1x128xf32>
    %8 = arith.subf %6, %7 : vector<1x128xf32>
    %cst_6 = arith.constant 0.000000e+00 : f32
    %9 = vector.broadcast %cst_6 : f32 to vector<1x128xf32>
    %10 = arith.maximumf %8, %9 : vector<1x128xf32>
    %c0_7 = arith.constant 0 : index
    %c0_8 = arith.constant 0 : index
    %11 = vector.load %arg4[%c0_7, %c0_8] : memref<1x128xf32, #tpu.memory_space<vmem>>, vector<1x128xf32>
    %cst_9 = arith.constant 9.99999974E-6 : f32
    %12 = vector.broadcast %cst_9 : f32 to vector<1x128xf32>
    %13 = arith.addf %10, %12 : vector<1x128xf32>
    %14 = math.rsqrt %13 : vector<1x128xf32>
    %15 = arith.mulf %11, %14 : vector<1x128xf32>
    %c0_10 = arith.constant 0 : index
    %c0_11 = arith.constant 0 : index
    %16 = vector.load %arg5[%c0_10, %c0_11] : memref<1x128xf32, #tpu.memory_space<vmem>>, vector<1x128xf32>
    %17 = arith.mulf %3, %15 : vector<1x128xf32>
    %18 = arith.subf %16, %17 : vector<1x128xf32>
    %19 = vector.broadcast %15 : vector<1x128xf32> to vector<32x128xf32>
    %20 = arith.mulf %0, %19 : vector<32x128xf32>
    %21 = vector.broadcast %18 : vector<1x128xf32> to vector<32x128xf32>
    %22 = arith.addf %20, %21 : vector<32x128xf32>
    %cst_12 = arith.constant 0.000000e+00 : f32
    %23 = vector.broadcast %cst_12 : f32 to vector<32x128xf32>
    %24 = arith.cmpf ogt, %22, %23 : vector<32x128xf32>
    %cst_13 = arith.constant 2.000000e-01 : f32
    %25 = vector.broadcast %cst_13 : f32 to vector<32x128xf32>
    %26 = arith.mulf %25, %22 : vector<32x128xf32>
    %27 = arith.select %24, %22, %26 : vector<32x128xi1>, vector<32x128xf32>
    %c0_14 = arith.constant 0 : index
    %c0_15 = arith.constant 0 : index
    %28 = vector.load %arg6[%c0_14, %c0_15] : memref<32x128xf32, #tpu.memory_space<vmem>>, vector<32x128xf32>
    tpu.vector_store %arg6[%c0_14, %c0_15], %27 {strides = array<i32>} : memref<32x128xf32, #tpu.memory_space<vmem>>, vector<32x128xf32>,
    return
  }
  func.func @transform_0(%arg0: i32) -> (i32, i32) {
    %c0_i32 = arith.constant 0 : i32
    %c0_i32_0 = arith.constant 0 : i32
    return %arg0, %c0_i32 : i32, i32
  }
  func.func @transform_1(%arg0: i32) -> (i32, i32) {
    %c0_i32 = arith.constant 0 : i32
    %c0_i32_0 = arith.constant 0 : i32
    %c0_i32_1 = arith.constant 0 : i32
    return %c0_i32, %c0_i32_0 : i32, i32
  }
  func.func @transform_2(%arg0: i32) -> (i32, i32) {
    %c0_i32 = arith.constant 0 : i32
    %c0_i32_0 = arith.constant 0 : i32
    %c0_i32_1 = arith.constant 0 : i32
    return %c0_i32, %c0_i32_0 : i32, i32
  }
  func.func @transform_3(%arg0: i32) -> (i32, i32) {
    %c0_i32 = arith.constant 0 : i32
    %c0_i32_0 = arith.constant 0 : i32
    %c0_i32_1 = arith.constant 0 : i32
    return %c0_i32, %c0_i32_0 : i32, i32
  }
  func.func @transform_4(%arg0: i32) -> (i32, i32) {
    %c0_i32 = arith.constant 0 : i32
    %c0_i32_0 = arith.constant 0 : i32
    %c0_i32_1 = arith.constant 0 : i32
    return %c0_i32, %c0_i32_0 : i32, i32
  }
  func.func @transform_5(%arg0: i32) -> (i32, i32) {
    %c0_i32 = arith.constant 0 : i32
    %c0_i32_0 = arith.constant 0 : i32
    return %arg0, %c0_i32 : i32, i32
  }
}

module attributes {stable_mosaic.version = 11 : i64} {
  func.func @_conv_bias_act_kernel(%arg0: i32, %arg1: memref<16x1024xbf16, #tpu.memory_space<vmem>>, %arg2: memref<1024x128xbf16, #tpu.memory_space<vmem>>, %arg3: memref<1x128xf32, #tpu.memory_space<vmem>>, %arg4: memref<16x128xf32, #tpu.memory_space<vmem>>) attributes {dimension_semantics = [#tpu.dimension_semantics<parallel>], iteration_bounds = array<i64: 1>, scalar_prefetch = 0 : i64, scratch_operands = 0 : i64, tpu.core_type = #tpu.core_type<tc>, window_params = [{transform_indices = @transform_0, window_bounds = array<i64: 16, 1024>}, {pipeline_mode = #tpu.pipeline_mode<synchronous>, transform_indices = @transform_1, window_bounds = array<i64: 1024, 128>}, {pipeline_mode = #tpu.pipeline_mode<synchronous>, transform_indices = @transform_2, window_bounds = array<i64: 1, 128>}, {transform_indices = @transform_3, window_bounds = array<i64: 16, 128>}]} {
    %c0 = arith.constant 0 : index
    %c0_0 = arith.constant 0 : index
    %0 = vector.load %arg1[%c0, %c0_0] : memref<16x1024xbf16, #tpu.memory_space<vmem>>, vector<16x1024xbf16>
    %c0_1 = arith.constant 0 : index
    %c0_2 = arith.constant 0 : index
    %1 = vector.load %arg2[%c0_1, %c0_2] : memref<1024x128xbf16, #tpu.memory_space<vmem>>, vector<1024x128xbf16>
    %cst = arith.constant dense<0.000000e+00> : vector<16x128xf32>
    %2 = tpu.matmul %0, %1, %cst {dimension_numbers = #tpu.dot_dimension_numbers<[1], [0], [0], [1], [0, 0, 1, 1], [], []>} : vector<16x1024xbf16>, vector<1024x128xbf16>, vector<16x128xf32> -> vector<16x128xf32>
    %c0_3 = arith.constant 0 : index
    %c0_4 = arith.constant 0 : index
    %3 = vector.load %arg3[%c0_3, %c0_4] : memref<1x128xf32, #tpu.memory_space<vmem>>, vector<1x128xf32>
    %4 = vector.broadcast %3 : vector<1x128xf32> to vector<16x128xf32>
    %5 = arith.addf %2, %4 : vector<16x128xf32>
    %c0_5 = arith.constant 0 : index
    %c0_6 = arith.constant 0 : index
    %6 = vector.load %arg4[%c0_5, %c0_6] : memref<16x128xf32, #tpu.memory_space<vmem>>, vector<16x128xf32>
    tpu.vector_store %arg4[%c0_5, %c0_6], %5 {strides = array<i32>} : memref<16x128xf32, #tpu.memory_space<vmem>>, vector<16x128xf32>,
    return
  }
  func.func @transform_0(%arg0: i32) -> (i32, i32) {
    %c0_i32 = arith.constant 0 : i32
    %c0_i32_0 = arith.constant 0 : i32
    return %arg0, %c0_i32 : i32, i32
  }
  func.func @transform_1(%arg0: i32) -> (i32, i32) {
    %c0_i32 = arith.constant 0 : i32
    %c0_i32_0 = arith.constant 0 : i32
    %c0_i32_1 = arith.constant 0 : i32
    return %c0_i32, %c0_i32_0 : i32, i32
  }
  func.func @transform_2(%arg0: i32) -> (i32, i32) {
    %c0_i32 = arith.constant 0 : i32
    %c0_i32_0 = arith.constant 0 : i32
    %c0_i32_1 = arith.constant 0 : i32
    return %c0_i32, %c0_i32_0 : i32, i32
  }
  func.func @transform_3(%arg0: i32) -> (i32, i32) {
    %c0_i32 = arith.constant 0 : i32
    %c0_i32_0 = arith.constant 0 : i32
    return %arg0, %c0_i32 : i32, i32
  }
}

</mosaic_0001>

<bundles_post_ra>
// kernel: patch_discriminator_forward.8
= control target key start
LH: loop header
LB: loop body
LE: loop exit
PB: predicated region body
PF: predicated region fallthrough
CT: control target
= control target key end

     0   :  { %s835_s12 = smov 0   ;;  %s969_s0 = inlined_call_operand.vmem [shape: bf16[512,128], index: 0, kind: input, shape index: {}]   ;;  %s970_s1 = inlined_call_operand.vmem [shape: bf16[128,128], index: 1, kind: input, shape index: {}]   ;;  %s971_s2 = inlined_call_operand.vmem [shape: f32[1,128], index: 2, kind: input, shape index: {}]   ;;  %s972_s3 = inlined_call_operand.vmem [shape: f32[512,128], index: 3, kind: output, shape index: {}]  }
   0x1 LB: > { %s643_s13 = sadd.s32 4294967295, %s813_s12   ;;  %p647_p0 = scmp.ge.s32.totalorder %s813_s12, 1  ;;  %s813_s12 = sphi %s835_s12, %s13_s12  }
   0x2   : > { %p138_p1 = scmp.lt.s32.totalorder %s813_s12, 3 }
   0x4   : > { %p139_p2 = pnand %p647_p0, %p138_p1 }
   0x5   : > { %s648_s22 = sshll.u32 (!%p139_p2), %s643_s13, 5 }
   0x6   : > { %142 = sbr.rel (%p139_p2) target bundleno = 239 (0xef), region = 32  ;;  %p163_p3 = scmp.lt.s32.totalorder (!%p139_p2), %s648_s22, 63 }
   0xb   : > { %v773_v0 = vld [vmem:[%s970_s1 + $0x38] sm:$0xff]  ;;  %v772_v1 = vld [vmem:[%s970_s1 + $0x30] sm:$0xff]  ;;  %v771_v2 = vld [vmem:[%s970_s1 + $0x28] sm:$0xff]  ;;  %s974_s22 = smov (!%p163_p3, %s648_s22), 63 }
   0xc   : > { %370 = vmatpush.bf16.msra.mxu0 %v773_v0  ;;  %774 = vmatpush.bf16.msra.mxu1 %v773_v0  ;;  %v770_v3 = vld [vmem:[%s970_s1 + $0x20] sm:$0xff]  ;;  %v769_v4 = vld [vmem:[%s970_s1 + $0x18] sm:$0xff]  ;;  %v768_v5 = vld [vmem:[%s970_s1 + $0x10] sm:$0xff]  ;;  %s649_s29 = sshll.u32 %s974_s22, 2  ;;  %s651_s10 = sshll.u32 %s974_s22, 3 }
   0xd   : > { %775 = vmatpush.bf16.msra.mxu2 %v773_v0  ;;  %776 = vmatpush.bf16.msra.mxu3 %v773_v0  ;;  %v767_v6 = vld [vmem:[%s970_s1 + $0x8] sm:$0xff]  ;;  %v766_v7 = vld [vmem:[%s970_s1] sm:$0xff]  ;;  %s873_s7 = scalar_lea.vmem %s969_s0, %s649_s29  ;;  %s902_s14 = scalar_lea.vmem %s972_s3, %s651_s10 }
   0xe   : > { %v750_v8 = vld [vmem:[%s873_s7] sm:$0xff]  ;;  %v751_v12 = vld [vmem:[%s873_s7 + $0x8] sm:$0xff]  ;;  %v752_v16 = vld [vmem:[%s873_s7 + $0x10] sm:$0xff] }
   0xf   : > { %v754_v9 = vld [vmem:[%s873_s7 + $0x20] sm:$0xff]  ;;  %v755_v13 = vld [vmem:[%s873_s7 + $0x28] sm:$0xff]  ;;  %v756_v17 = vld [vmem:[%s873_s7 + $0x30] sm:$0xff] }
  0x10   : > { %371 = vmatpush.bf16.msra.mxu0 %v772_v1  ;;  %777 = vmatpush.bf16.msra.mxu1 %v772_v1  ;;  %v758_v10 = vld [vmem:[%s873_s7 + $0x40] sm:$0xff]  ;;  %v759_v14 = vld [vmem:[%s873_s7 + $0x48] sm:$0xff]  ;;  %v760_v18 = vld [vmem:[%s873_s7 + $0x50] sm:$0xff] }
  0x11   : > { %778 = vmatpush.bf16.msra.mxu2 %v772_v1  ;;  %779 = vmatpush.bf16.msra.mxu3 %v772_v1  ;;  %v762_v11 = vld [vmem:[%s873_s7 + $0x60] sm:$0xff]  ;;  %v763_v15 = vld [vmem:[%s873_s7 + $0x68] sm:$0xff]  ;;  %v764_v19 = vld [vmem:[%s873_s7 + $0x70] sm:$0xff] }
  0x12   : > { %v753_v20 = vld [vmem:[%s873_s7 + $0x18] sm:$0xff]  ;;  %v894_v24 = vld [vmem:[%s971_s2] ss:$0 sm:$0xff] }
  0x13   : > { %v757_v21 = vld [vmem:[%s873_s7 + $0x38] sm:$0xff] }
  0x14   : > { %372 = vmatpush.bf16.msra.mxu0 %v771_v2  ;;  %780 = vmatpush.bf16.msra.mxu1 %v771_v2  ;;  %v761_v22 = vld [vmem:[%s873_s7 + $0x58] sm:$0xff] }
  0x15   : > { %781 = vmatpush.bf16.msra.mxu2 %v771_v2  ;;  %782 = vmatpush.bf16.msra.mxu3 %v771_v2  ;;  %v765_v23 = vld [vmem:[%s873_s7 + $0x78] sm:$0xff] }
  0x18   : > { %373 = vmatpush.bf16.msra.mxu0 %v770_v3  ;;  %783 = vmatpush.bf16.msra.mxu1 %v770_v3 }
  0x19   : > { %784 = vmatpush.bf16.msra.mxu2 %v770_v3  ;;  %785 = vmatpush.bf16.msra.mxu3 %v770_v3 }
  0x1c   : > { %374 = vmatpush.bf16.msra.mxu0 %v769_v4  ;;  %786 = vmatpush.bf16.msra.mxu1 %v769_v4 }
  0x1d   : > { %787 = vmatpush.bf16.msra.mxu2 %v769_v4  ;;  %788 = vmatpush.bf16.msra.mxu3 %v769_v4 }
  0x20   : > { %375 = vmatpush.bf16.msra.mxu0 %v768_v5  ;;  %789 = vmatpush.bf16.msra.mxu1 %v768_v5 }
  0x21   : > { %790 = vmatpush.bf16.msra.mxu2 %v768_v5  ;;  %791 = vmatpush.bf16.msra.mxu3 %v768_v5 }
  0x24   : > { %376 = vmatpush.bf16.msra.mxu0 %v767_v6  ;;  %792 = vmatpush.bf16.msra.mxu1 %v767_v6 }
  0x25   : > { %793 = vmatpush.bf16.msra.mxu2 %v767_v6  ;;  %794 = vmatpush.bf16.msra.mxu3 %v767_v6 }
  0x28   : > { %377 = vmatpush.bf16.msra.mxu0 %v766_v7  ;;  %795 = vmatpush.bf16.msra.mxu1 %v766_v7 }
  0x29   : > { %796 = vmatpush.bf16.msra.mxu2 %v766_v7  ;;  %797 = vmatpush.bf16.msra.mxu3 %v766_v7 }
  0x2b   : > { %378 = vmatmul.bf16.vlgmr.msra.gmra.mxu0 %v750_v8  ;;  %398 = vmatmul.bf16.vlgmr.msra.gmra.mxu1 %v754_v9 }
  0x2c   : > { %418 = vmatmul.bf16.vlgmr.msra.gmra.mxu2 %v758_v10  ;;  %438 = vmatmul.bf16.vlgmr.msra.gmra.mxu3 %v762_v11 }
  0x3b   : > { %383 = vmatmul.bf16.gmra.mxu0 %v751_v12  ;;  %403 = vmatmul.bf16.gmra.mxu1 %v755_v13 }
  0x3c   : > { %423 = vmatmul.bf16.gmra.mxu2 %v759_v14  ;;  %443 = vmatmul.bf16.gmra.mxu3 %v763_v15 }
  0x4b   : > { %388 = vmatmul.bf16.gmra.mxu0 %v752_v16  ;;  %408 = vmatmul.bf16.gmra.mxu1 %v756_v17 }
  0x4c   : > { %428 = vmatmul.bf16.gmra.mxu2 %v760_v18  ;;  %448 = vmatmul.bf16.gmra.mxu3 %v764_v19 }
  0x5b   : > { %393 = vmatmul.bf16.gmra.mxu0 %v753_v20  ;;  %413 = vmatmul.bf16.gmra.mxu1 %v757_v21 }
  0x5c   : > { %433 = vmatmul.bf16.gmra.mxu2 %v761_v22  ;;  %453 = vmatmul.bf16.gmra.mxu3 %v765_v23 }
  0xa8   : > { %v379_v25 = vpop.f32.mrf.mxu0  ;;  %v399_v26 = vpop.f32.mrf.mxu1 }
  0xa9   : > { %v380_v27 = vadd.f32 %v894_v24, %v379_v25  ;;  %v400_v28 = vadd.f32 %v894_v24, %v399_v26 }
  0xab   : > { %vm459_vm0 = vcmp.gt.f32.partialorder %v380_v27, 0.0  ;;  %v491_v29 = vmul.f32 0.2, %v380_v27  ;;  %vm467_vm1 = vcmp.gt.f32.partialorder %v400_v28, 0.0  ;;  %v499_v30 = vmul.f32 0.2, %v400_v28 }
  0xad   : > { %v523_v31 = vsel %vm459_vm0, %v380_v27, %v491_v29  ;;  %v531_v32 = vsel %vm467_vm1, %v400_v28, %v499_v30 }
  0xae   : > { %555 = vst [vmem:[%s902_s14] sm:$0xff] %v523_v31 }
  0xaf   : > { %563 = vst [vmem:[%s902_s14 + $0x40] sm:$0xff] %v531_v32  ;;  %v419_v33 = vpop.f32.mrf.mxu2  ;;  %v439_v34 = vpop.f32.mrf.mxu3 }
  0xb0   : > { %v420_v35 = vadd.f32 %v894_v24, %v419_v33  ;;  %v440_v36 = vadd.f32 %v894_v24, %v439_v34  ;;  %v381_v37 = vpop.f32.mrf.mxu0  ;;  %v401_v38 = vpop.f32.mrf.mxu1 }
  0xb1   : > { %v382_v39 = vadd.f32 %v894_v24, %v381_v37  ;;  %v402_v40 = vadd.f32 %v894_v24, %v401_v38 }
  0xb2   : > { %vm475_vm2 = vcmp.gt.f32.partialorder %v420_v35, 0.0  ;;  %v507_v41 = vmul.f32 0.2, %v420_v35  ;;  %vm483_vm3 = vcmp.gt.f32.partialorder %v440_v36, 0.0  ;;  %v515_v42 = vmul.f32 0.2, %v440_v36 }
  0xb3   : > { %vm460_vm4 = vcmp.gt.f32.partialorder %v382_v39, 0.0  ;;  %v492_v43 = vmul.f32 0.2, %v382_v39  ;;  %vm468_vm5 = vcmp.gt.f32.partialorder %v402_v40, 0.0  ;;  %v500_v44 = vmul.f32 0.2, %v402_v40 }
  0xb4   : > { %v539_v45 = vsel %vm475_vm2, %v420_v35, %v507_v41  ;;  %v547_v46 = vsel %vm483_vm3, %v440_v36, %v515_v42 }
  0xb5   : > { %571 = vst [vmem:[%s902_s14 + $0x80] sm:$0xff] %v539_v45  ;;  %v524_v47 = vsel %vm460_vm4, %v382_v39, %v492_v43  ;;  %v532_v48 = vsel %vm468_vm5, %v402_v40, %v500_v44 }
  0xb6   : > { %579 = vst [vmem:[%s902_s14 + $0xc0] sm:$0xff] %v547_v46 }
  0xb7   : > { %556 = vst [vmem:[%s902_s14 + $0x8] sm:$0xff] %v524_v47  ;;  %v421_v49 = vpop.f32.mrf.mxu2  ;;  %v441_v50 = vpop.f32.mrf.mxu3 }
  0xb8   : > { %564 = vst [vmem:[%s902_s14 + $0x48] sm:$0xff] %v532_v48  ;;  %v422_v51 = vadd.f32 %v894_v24, %v421_v49  ;;  %v442_v52 = vadd.f32 %v894_v24, %v441_v50  ;;  %v384_v53 = vpop.f32.mrf.mxu0  ;;  %v404_v54 = vpop.f32.mrf.mxu1 }
  0xb9   : > { %v385_v55 = vadd.f32 %v894_v24, %v384_v53  ;;  %v405_v56 = vadd.f32 %v894_v24, %v404_v54 }
  0xba   : > { %vm476_vm6 = vcmp.gt.f32.partialorder %v422_v51, 0.0  ;;  %v508_v57 = vmul.f32 0.2, %v422_v51  ;;  %vm484_vm7 = vcmp.gt.f32.partialorder %v442_v52, 0.0  ;;  %v516_v58 = vmul.f32 0.2, %v442_v52 }
  0xbb   : > { %vm461_vm8 = vcmp.gt.f32.partialorder %v385_v55, 0.0  ;;  %v493_v59 = vmul.f32 0.2, %v385_v55  ;;  %vm469_vm9 = vcmp.gt.f32.partialorder %v405_v56, 0.0  ;;  %v501_v60 = vmul.f32 0.2, %v405_v56 }
  0xbc   : > { %v540_v61 = vsel %vm476_vm6, %v422_v51, %v508_v57  ;;  %v548_v62 = vsel %vm484_vm7, %v442_v52, %v516_v58 }
  0xbd   : > { %572 = vst [vmem:[%s902_s14 + $0x88] sm:$0xff] %v540_v61  ;;  %v525_v63 = vsel %vm461_vm8, %v385_v55, %v493_v59  ;;  %v533_v0 = vsel %vm469_vm9, %v405_v56, %v501_v60 }
  0xbe   : > { %580 = vst [vmem:[%s902_s14 + $0xc8] sm:$0xff] %v548_v62 }
  0xbf   : > { %557 = vst [vmem:[%s902_s14 + $0x10] sm:$0xff] %v525_v63  ;;  %v424_v1 = vpop.f32.mrf.mxu2  ;;  %v444_v2 = vpop.f32.mrf.mxu3 }
  0xc0   : > { %565 = vst [vmem:[%s902_s14 + $0x50] sm:$0xff] %v533_v0  ;;  %v425_v3 = vadd.f32 %v894_v24, %v424_v1  ;;  %v445_v4 = vadd.f32 %v894_v24, %v444_v2  ;;  %v386_v5 = vpop.f32.mrf.mxu0  ;;  %v406_v6 = vpop.f32.mrf.mxu1 }
  0xc1   : > { %v387_v7 = vadd.f32 %v894_v24, %v386_v5  ;;  %v407_v8 = vadd.f32 %v894_v24, %v406_v6 }
  0xc2   : > { %vm477_vm10 = vcmp.gt.f32.partialorder %v425_v3, 0.0  ;;  %v509_v9 = vmul.f32 0.2, %v425_v3  ;;  %vm485_vm11 = vcmp.gt.f32.partialorder %v445_v4, 0.0  ;;  %v517_v10 = vmul.f32 0.2, %v445_v4 }
  0xc3   : > { %vm462_vm12 = vcmp.gt.f32.partialorder %v387_v7, 0.0  ;;  %v494_v11 = vmul.f32 0.2, %v387_v7  ;;  %vm470_vm13 = vcmp.gt.f32.partialorder %v407_v8, 0.0  ;;  %v502_v12 = vmul.f32 0.2, %v407_v8 }
  0xc4   : > { %v541_v13 = vsel %vm477_vm10, %v425_v3, %v509_v9  ;;  %v549_v14 = vsel %vm485_vm11, %v445_v4, %v517_v10 }
  0xc5   : > { %573 = vst [vmem:[%s902_s14 + $0x90] sm:$0xff] %v541_v13  ;;  %v526_v15 = vsel %vm462_vm12, %v387_v7, %v494_v11  ;;  %v534_v16 = vsel %vm470_vm13, %v407_v8, %v502_v12 }
  0xc6   : > { %581 = vst [vmem:[%s902_s14 + $0xd0] sm:$0xff] %v549_v14 }
  0xc7   : > { %558 = vst [vmem:[%s902_s14 + $0x18] sm:$0xff] %v526_v15  ;;  %v426_v17 = vpop.f32.mrf.mxu2  ;;  %v446_v18 = vpop.f32.mrf.mxu3 }
  0xc8   : > { %566 = vst [vmem:[%s902_s14 + $0x58] sm:$0xff] %v534_v16  ;;  %v427_v19 = vadd.f32 %v894_v24, %v426_v17  ;;  %v447_v20 = vadd.f32 %v894_v24, %v446_v18  ;;  %v389_v21 = vpop.f32.mrf.mxu0  ;;  %v409_v22 = vpop.f32.mrf.mxu1 }
  0xc9   : > { %v390_v23 = vadd.f32 %v894_v24, %v389_v21  ;;  %v410_v25 = vadd.f32 %v894_v24, %v409_v22 }
  0xca   : > { %vm478_vm14 = vcmp.gt.f32.partialorder %v427_v19, 0.0  ;;  %v510_v26 = vmul.f32 0.2, %v427_v19  ;;  %vm486_vm15 = vcmp.gt.f32.partialorder %v447_v20, 0.0  ;;  %v518_v27 = vmul.f32 0.2, %v447_v20 }
  0xcb   : > { %vm463_vm0 = vcmp.gt.f32.partialorder %v390_v23, 0.0  ;;  %v495_v28 = vmul.f32 0.2, %v390_v23  ;;  %vm471_vm1 = vcmp.gt.f32.partialorder %v410_v25, 0.0  ;;  %v503_v29 = vmul.f32 0.2, %v410_v25 }
  0xcc   : > { %v542_v30 = vsel %vm478_vm14, %v427_v19, %v510_v26  ;;  %v550_v31 = vsel %vm486_vm15, %v447_v20, %v518_v27 }
  0xcd   : > { %574 = vst [vmem:[%s902_s14 + $0x98] sm:$0xff] %v542_v30  ;;  %v527_v32 = vsel %vm463_vm0, %v390_v23, %v495_v28  ;;  %v535_v33 = vsel %vm471_vm1, %v410_v25, %v503_v29 }
  0xce   : > { %582 = vst [vmem:[%s902_s14 + $0xd8] sm:$0xff] %v550_v31 }
  0xcf   : > { %559 = vst [vmem:[%s902_s14 + $0x20] sm:$0xff] %v527_v32  ;;  %v429_v34 = vpop.f32.mrf.mxu2  ;;  %v449_v35 = vpop.f32.mrf.mxu3 }
  0xd0   : > { %567 = vst [vmem:[%s902_s14 + $0x60] sm:$0xff] %v535_v33  ;;  %v430_v36 = vadd.f32 %v894_v24, %v429_v34  ;;  %v450_v37 = vadd.f32 %v894_v24, %v449_v35  ;;  %v391_v38 = vpop.f32.mrf.mxu0  ;;  %v411_v39 = vpop.f32.mrf.mxu1 }
  0xd1   : > { %v392_v40 = vadd.f32 %v894_v24, %v391_v38  ;;  %v412_v41 = vadd.f32 %v894_v24, %v411_v39 }
  0xd2   : > { %vm479_vm2 = vcmp.gt.f32.partialorder %v430_v36, 0.0  ;;  %v511_v42 = vmul.f32 0.2, %v430_v36  ;;  %vm487_vm3 = vcmp.gt.f32.partialorder %v450_v37, 0.0  ;;  %v519_v43 = vmul.f32 0.2, %v450_v37 }
  0xd3   : > { %vm464_vm4 = vcmp.gt.f32.partialorder %v392_v40, 0.0  ;;  %v496_v44 = vmul.f32 0.2, %v392_v40  ;;  %vm472_vm5 = vcmp.gt.f32.partialorder %v412_v41, 0.0  ;;  %v504_v45 = vmul.f32 0.2, %v412_v41 }
  0xd4   : > { %v543_v46 = vsel %vm479_vm2, %v430_v36, %v511_v42  ;;  %v551_v47 = vsel %vm487_vm3, %v450_v37, %v519_v43 }
  0xd5   : > { %575 = vst [vmem:[%s902_s14 + $0xa0] sm:$0xff] %v543_v46  ;;  %v528_v48 = vsel %vm464_vm4, %v392_v40, %v496_v44  ;;  %v536_v49 = vsel %vm472_vm5, %v412_v41, %v504_v45 }
  0xd6   : > { %583 = vst [vmem:[%s902_s14 + $0xe0] sm:$0xff] %v551_v47 }
  0xd7   : > { %560 = vst [vmem:[%s902_s14 + $0x28] sm:$0xff] %v528_v48  ;;  %v431_v50 = vpop.f32.mrf.mxu2  ;;  %v451_v51 = vpop.f32.mrf.mxu3 }
  0xd8   : > { %568 = vst [vmem:[%s902_s14 + $0x68] sm:$0xff] %v536_v49  ;;  %v432_v52 = vadd.f32 %v894_v24, %v431_v50  ;;  %v452_v53 = vadd.f32 %v894_v24, %v451_v51  ;;  %v394_v54 = vpop.f32.mrf.mxu0  ;;  %v414_v55 = vpop.f32.mrf.mxu1 }
  0xd9   : > { %v395_v56 = vadd.f32 %v894_v24, %v394_v54  ;;  %v415_v57 = vadd.f32 %v894_v24, %v414_v55 }
  0xda   : > { %vm480_vm6 = vcmp.gt.f32.partialorder %v432_v52, 0.0  ;;  %v512_v58 = vmul.f32 0.2, %v432_v52  ;;  %vm488_vm7 = vcmp.gt.f32.partialorder %v452_v53, 0.0  ;;  %v520_v59 = vmul.f32 0.2, %v452_v53 }
  0xdb   : > { %vm465_vm8 = vcmp.gt.f32.partialorder %v395_v56, 0.0  ;;  %v497_v60 = vmul.f32 0.2, %v395_v56  ;;  %vm473_vm9 = vcmp.gt.f32.partialorder %v415_v57, 0.0  ;;  %v505_v61 = vmul.f32 0.2, %v415_v57 }
  0xdc   : > { %v544_v62 = vsel %vm480_vm6, %v432_v52, %v512_v58  ;;  %v552_v63 = vsel %vm488_vm7, %v452_v53, %v520_v59 }
  0xdd   : > { %576 = vst [vmem:[%s902_s14 + $0xa8] sm:$0xff] %v544_v62  ;;  %v529_v0 = vsel %vm465_vm8, %v395_v56, %v497_v60  ;;  %v537_v1 = vsel %vm473_vm9, %v415_v57, %v505_v61 }
  0xde   : > { %584 = vst [vmem:[%s902_s14 + $0xe8] sm:$0xff] %v552_v63 }
  0xdf   : > { %561 = vst [vmem:[%s902_s14 + $0x30] sm:$0xff] %v529_v0  ;;  %v434_v2 = vpop.f32.mrf.mxu2  ;;  %v454_v3 = vpop.f32.mrf.mxu3 }
  0xe0   : > { %569 = vst [vmem:[%s902_s14 + $0x70] sm:$0xff] %v537_v1  ;;  %v435_v4 = vadd.f32 %v894_v24, %v434_v2  ;;  %v455_v5 = vadd.f32 %v894_v24, %v454_v3  ;;  %v396_v6 = vpop.f32.mrf.mxu0  ;;  %v416_v7 = vpop.f32.mrf.mxu1 }
  0xe1   : > { %v397_v8 = vadd.f32 %v894_v24, %v396_v6  ;;  %v417_v9 = vadd.f32 %v894_v24, %v416_v7 }
  0xe2   : > { %vm481_vm10 = vcmp.gt.f32.partialorder %v435_v4, 0.0  ;;  %v513_v10 = vmul.f32 0.2, %v435_v4  ;;  %vm489_vm11 = vcmp.gt.f32.partialorder %v455_v5, 0.0  ;;  %v521_v11 = vmul.f32 0.2, %v455_v5 }
  0xe3   : > { %vm466_vm12 = vcmp.gt.f32.partialorder %v397_v8, 0.0  ;;  %v498_v12 = vmul.f32 0.2, %v397_v8  ;;  %vm474_vm13 = vcmp.gt.f32.partialorder %v417_v9, 0.0  ;;  %v506_v13 = vmul.f32 0.2, %v417_v9 }
  0xe4   : > { %v545_v14 = vsel %vm481_vm10, %v435_v4, %v513_v10  ;;  %v553_v15 = vsel %vm489_vm11, %v455_v5, %v521_v11 }
  0xe5   : > { %577 = vst [vmem:[%s902_s14 + $0xb0] sm:$0xff] %v545_v14  ;;  %v530_v16 = vsel %vm466_vm12, %v397_v8, %v498_v12  ;;  %v538_v17 = vsel %vm474_vm13, %v417_v9, %v506_v13 }
  0xe6   : > { %585 = vst [vmem:[%s902_s14 + $0xf0] sm:$0xff] %v553_v15 }
  0xe7   : > { %562 = vst [vmem:[%s902_s14 + $0x38] sm:$0xff] %v530_v16  ;;  %v436_v18 = vpop.f32.mrf.mxu2  ;;  %v456_v19 = vpop.f32.mrf.mxu3 }
  0xe8   : > { %570 = vst [vmem:[%s902_s14 + $0x78] sm:$0xff] %v538_v17  ;;  %v437_v20 = vadd.f32 %v894_v24, %v436_v18  ;;  %v457_v21 = vadd.f32 %v894_v24, %v456_v19 }
  0xea   : > { %vm482_vm14 = vcmp.gt.f32.partialorder %v437_v20, 0.0  ;;  %v514_v22 = vmul.f32 0.2, %v437_v20  ;;  %vm490_vm15 = vcmp.gt.f32.partialorder %v457_v21, 0.0  ;;  %v522_v23 = vmul.f32 0.2, %v457_v21 }
  0xec   : > { %v546_v25 = vsel %vm482_vm14, %v437_v20, %v514_v22  ;;  %v554_v26 = vsel %vm490_vm15, %v457_v21, %v522_v23 }
  0xed   : > { %578 = vst [vmem:[%s902_s14 + $0xb8] sm:$0xff] %v546_v25 }
  0xee   : > { %586 = vst [vmem:[%s902_s14 + $0xf8] sm:$0xff] %v554_v26 }
  0xef PF: > { %s13_s12 = sadd.s32 1, %s813_s12  }
  0xf0   : > { %p10_p4 = scmp.ge.s32.totalorder %s13_s12, 4  }
  0xf2   :  { %12 = sbr.rel (!%p10_p4) target bundleno = 1 (0x1), region = 62 }

// kernel: patch_discriminator_forward.10
= control target key start
LH: loop header
LB: loop body
LE: loop exit
PB: predicated region body
PF: predicated region fallthrough
CT: control target
= control target key end

     0   :  { %s341_s1 = inlined_call_operand.vmem [shape: f32[1,128], index: 1, kind: input, shape index: {}]   ;;  %s342_s2 = inlined_call_operand.vmem [shape: f32[1,128], index: 2, kind: input, shape index: {}]   ;;  %s343_s3 = inlined_call_operand.vmem [shape: f32[1,128], index: 3, kind: input, shape index: {}]   ;;  %s344_s0 = inlined_call_operand.vmem [shape: f32[128,128], index: 0, kind: input, shape index: {}]   ;;  %s345_s4 = inlined_call_operand.vmem [shape: f32[1,128], index: 4, kind: input, shape index: {}]   ;;  %s346_s5 = inlined_call_operand.vmem [shape: f32[128,128], index: 5, kind: output, shape index: {}]  }
   0x1   :  { %v36_v0 = vld [vmem:[%s341_s1] sm:$0x1]  ;;  %v21_v19 = vld [vmem:[%s344_s0 + $0x8] sm:$0xff]  ;;  %v22_v20 = vld [vmem:[%s344_s0 + $0x10] sm:$0xff] }
   0x2   :  { %v38_v1 = vld [vmem:[%s342_s2] sm:$0x1]  ;;  %v37_v2 = vmul.f32 0.0078125, %v36_v0  ;;  %v23_v21 = vld [vmem:[%s344_s0 + $0x18] sm:$0xff]  ;;  %v25_v25 = vld [vmem:[%s344_s0 + $0x28] sm:$0xff] }
   0x3   :  { %v39_v3 = vmul.f32 0.0078125, %v38_v1  ;;  %v43_v13 = vld [vmem:[%s343_s3] sm:$0x1]  ;;  %v26_v26 = vld [vmem:[%s344_s0 + $0x30] sm:$0xff]  ;;  %v27_v27 = vld [vmem:[%s344_s0 + $0x38] sm:$0xff] }
   0x4   :  { %v40_v4 = vmul.f32 %v37_v2, %v37_v2  ;;  %v20_v16 = vld [vmem:[%s344_s0] sm:$0xff]  ;;  %v29_v29 = vld [vmem:[%s344_s0 + $0x48] sm:$0xff]  ;;  %v30_v30 = vld [vmem:[%s344_s0 + $0x50] sm:$0xff] }
   0x5   :  { %v56_v18 = vld [vmem:[%s345_s4] sm:$0x1]  ;;  %v31_v35 = vld [vmem:[%s344_s0 + $0x58] sm:$0xff]  ;;  %v33_v37 = vld [vmem:[%s344_s0 + $0x68] sm:$0xff] }
   0x6   :  { %v41_v5 = vsub.f32 %v39_v3, %v40_v4  ;;  %v24_v22 = vld [vmem:[%s344_s0 + $0x20] sm:$0xff] }
   0x7   :  { %v28_v28 = vld [vmem:[%s344_s0 + $0x40] sm:$0xff] }
   0x8   :  { %v42_v6 = vmax.f32 %v41_v5, 0.0  ;;  %v32_v36 = vld [vmem:[%s344_s0 + $0x60] sm:$0xff] }
   0xa   :  { %v44_v7 = vadd.f32 1e-05, %v42_v6 }
   0xc   :  { %165 = vrsqrt.f32 %v44_v7  ;;  %vm51_vm0 = vweird.f32 %v44_v7 }
  0x12   :  { %v166_v8 = vpop.eup %165 }
  0x13   :  { %v46_v9 = vmul.f32 %v166_v8, %v44_v7  ;;  %vm52_vm1 = vweird.f32 %v166_v8 }
  0x14   :  { %vm53_vm2 = vmor %vm51_vm0, %vm52_vm1 }
  0x15   :  { %v47_v10 = vmul.f32 %v166_v8, %v46_v9 }
  0x17   :  { %v48_v11 = vmul.f32 0.5, %v47_v10 }
  0x19   :  { %v49_v12 = vsub.f32 1.5, %v48_v11 }
  0x1b   :  { %v50_v14 = vmul.f32 %v166_v8, %v49_v12 }
  0x1d   :  { %v54_v15 = vsel %vm53_vm2, %v166_v8, %v50_v14  ;;  %v34_v14 = vld [vmem:[%s344_s0 + $0x70] sm:$0xff] }
  0x1e   :  { %v55_v17 = vmul.f32 %v54_v15, %v43_v13 }
  0x20   :  { %v57_v23 = vmul.f32 %v55_v17, %v37_v2  ;;  %v224_v24 = vperm.slane %v55_v17, 0  ;;  %v35_v17 = vld [vmem:[%s344_s0 + $0x78] sm:$0xff] }
  0x22   :  { %v58_v31 = vsub.f32 %v56_v18, %v57_v23  ;;  %v62_v32 = vmul.f32 %v224_v24, %v20_v16  ;;  %v63_v33 = vmul.f32 %v224_v24, %v21_v19  ;;  %v64_v34 = vmul.f32 %v224_v24, %v22_v20 }
  0x23   :  { %v65_v38 = vmul.f32 %v224_v24, %v23_v21  ;;  %v66_v39 = vmul.f32 %v224_v24, %v24_v22  ;;  %v67_v40 = vmul.f32 %v224_v24, %v25_v25  ;;  %v68_v41 = vmul.f32 %v224_v24, %v26_v26 }
  0x24   :  { %v260_v42 = vperm.slane %v58_v31, 0  ;;  %v69_v43 = vmul.f32 %v224_v24, %v27_v27  ;;  %v70_v44 = vmul.f32 %v224_v24, %v28_v28  ;;  %v71_v45 = vmul.f32 %v224_v24, %v29_v29 }
  0x25   :  { %v72_v46 = vmul.f32 %v224_v24, %v30_v30  ;;  %v73_v47 = vmul.f32 %v224_v24, %v31_v35  ;;  %v74_v48 = vmul.f32 %v224_v24, %v32_v36  ;;  %v75_v49 = vmul.f32 %v224_v24, %v33_v37 }
  0x26   :  { %v81_v50 = vadd.f32 %v260_v42, %v62_v32  ;;  %v82_v51 = vadd.f32 %v260_v42, %v63_v33  ;;  %v83_v52 = vadd.f32 %v260_v42, %v64_v34  ;;  %v84_v53 = vadd.f32 %v260_v42, %v65_v38 }
  0x27   :  { %v85_v54 = vadd.f32 %v260_v42, %v66_v39  ;;  %v86_v55 = vadd.f32 %v260_v42, %v67_v40  ;;  %v87_v56 = vadd.f32 %v260_v42, %v68_v41  ;;  %v88_v57 = vadd.f32 %v260_v42, %v69_v43 }
  0x28   :  { %vm97_vm3 = vcmp.gt.f32.partialorder %v81_v50, 0.0  ;;  %v113_v58 = vmul.f32 0.2, %v81_v50  ;;  %vm98_vm4 = vcmp.gt.f32.partialorder %v82_v51, 0.0  ;;  %v114_v59 = vmul.f32 0.2, %v82_v51 }
  0x29   :  { %vm99_vm5 = vcmp.gt.f32.partialorder %v83_v52, 0.0  ;;  %v115_v60 = vmul.f32 0.2, %v83_v52  ;;  %vm100_vm6 = vcmp.gt.f32.partialorder %v84_v53, 0.0  ;;  %v116_v61 = vmul.f32 0.2, %v84_v53 }
  0x2a   :  { %v129_v62 = vsel %vm97_vm3, %v81_v50, %v113_v58  ;;  %v130_v63 = vsel %vm98_vm4, %v82_v51, %v114_v59  ;;  %vm101_vm7 = vcmp.gt.f32.partialorder %v85_v54, 0.0  ;;  %v117_v0 = vmul.f32 0.2, %v85_v54 }
  0x2b   :  { %145 = vst [vmem:[%s346_s5] sm:$0xff] %v129_v62  ;;  %v131_v1 = vsel %vm99_vm5, %v83_v52, %v115_v60  ;;  %v132_v2 = vsel %vm100_vm6, %v84_v53, %v116_v61  ;;  %vm102_vm8 = vcmp.gt.f32.partialorder %v86_v55, 0.0  ;;  %v118_v3 = vmul.f32 0.2, %v86_v55 }
  0x2c   :  { %146 = vst [vmem:[%s346_s5 + $0x8] sm:$0xff] %v130_v63  ;;  %v133_v4 = vsel %vm101_vm7, %v85_v54, %v117_v0  ;;  %vm103_vm9 = vcmp.gt.f32.partialorder %v87_v56, 0.0  ;;  %v119_v5 = vmul.f32 0.2, %v87_v56  ;;  %vm104_vm10 = vcmp.gt.f32.partialorder %v88_v57, 0.0 }
  0x2d   :  { %147 = vst [vmem:[%s346_s5 + $0x10] sm:$0xff] %v131_v1  ;;  %v134_v6 = vsel %vm102_vm8, %v86_v55, %v118_v3  ;;  %v120_v7 = vmul.f32 0.2, %v88_v57  ;;  %v89_v8 = vadd.f32 %v260_v42, %v70_v44  ;;  %v90_v9 = vadd.f32 %v260_v42, %v71_v45 }
  0x2e   :  { %148 = vst [vmem:[%s346_s5 + $0x18] sm:$0xff] %v132_v2  ;;  %v135_v10 = vsel %vm103_vm9, %v87_v56, %v119_v5  ;;  %v91_v11 = vadd.f32 %v260_v42, %v72_v46  ;;  %v92_v12 = vadd.f32 %v260_v42, %v73_v47  ;;  %v93_v13 = vadd.f32 %v260_v42, %v74_v48 }
  0x2f   :  { %149 = vst [vmem:[%s346_s5 + $0x20] sm:$0xff] %v133_v4  ;;  %v136_v15 = vsel %vm104_vm10, %v88_v57, %v120_v7  ;;  %vm105_vm11 = vcmp.gt.f32.partialorder %v89_v8, 0.0  ;;  %v121_v16 = vmul.f32 0.2, %v89_v8  ;;  %vm106_vm12 = vcmp.gt.f32.partialorder %v90_v9, 0.0 }
  0x30   :  { %150 = vst [vmem:[%s346_s5 + $0x28] sm:$0xff] %v134_v6  ;;  %v122_v18 = vmul.f32 0.2, %v90_v9  ;;  %vm107_vm13 = vcmp.gt.f32.partialorder %v91_v11, 0.0  ;;  %v123_v19 = vmul.f32 0.2, %v91_v11  ;;  %v94_v20 = vadd.f32 %v260_v42, %v75_v49 }
  0x31   :  { %151 = vst [vmem:[%s346_s5 + $0x30] sm:$0xff] %v135_v10  ;;  %v137_v21 = vsel %vm105_vm11, %v89_v8, %v121_v16  ;;  %vm108_vm14 = vcmp.gt.f32.partialorder %v92_v12, 0.0  ;;  %v124_v22 = vmul.f32 0.2, %v92_v12  ;;  %vm109_vm15 = vcmp.gt.f32.partialorder %v93_v13, 0.0 }
  0x32   :  { %152 = vst [vmem:[%s346_s5 + $0x38] sm:$0xff] %v136_v15  ;;  %v138_v23 = vsel %vm106_vm12, %v90_v9, %v122_v18  ;;  %v139_v25 = vsel %vm107_vm13, %v91_v11, %v123_v19  ;;  %v125_v26 = vmul.f32 0.2, %v93_v13  ;;  %vm110_vm0 = vcmp.gt.f32.partialorder %v94_v20, 0.0 }
  0x33   :  { %153 = vst [vmem:[%s346_s5 + $0x40] sm:$0xff] %v137_v21  ;;  %v140_v27 = vsel %vm108_vm14, %v92_v12, %v124_v22  ;;  %v126_v28 = vmul.f32 0.2, %v94_v20  ;;  %v76_v29 = vmul.f32 %v224_v24, %v34_v14  ;;  %v77_v30 = vmul.f32 %v224_v24, %v35_v17 }
  0x34   :  { %154 = vst [vmem:[%s346_s5 + $0x48] sm:$0xff] %v138_v23  ;;  %v141_v31 = vsel %vm109_vm15, %v93_v13, %v125_v26 }
  0x35   :  { %155 = vst [vmem:[%s346_s5 + $0x50] sm:$0xff] %v139_v25  ;;  %v142_v32 = vsel %vm110_vm0, %v94_v20, %v126_v28  ;;  %v95_v33 = vadd.f32 %v260_v42, %v76_v29  ;;  %v96_v34 = vadd.f32 %v260_v42, %v77_v30 }
  0x36   :  { %156 = vst [vmem:[%s346_s5 + $0x58] sm:$0xff] %v140_v27 }
  0x37   :  { %157 = vst [vmem:[%s346_s5 + $0x60] sm:$0xff] %v141_v31  ;;  %vm111_vm1 = vcmp.gt.f32.partialorder %v95_v33, 0.0  ;;  %v127_v24 = vmul.f32 0.2, %v95_v33  ;;  %vm112_vm2 = vcmp.gt.f32.partialorder %v96_v34, 0.0 }
  0x38   :  { %158 = vst [vmem:[%s346_s5 + $0x68] sm:$0xff] %v142_v32  ;;  %v128_v35 = vmul.f32 0.2, %v96_v34 }
  0x39   :  { %v143_v36 = vsel %vm111_vm1, %v95_v33, %v127_v24 }
  0x3a   :  { %159 = vst [vmem:[%s346_s5 + $0x70] sm:$0xff] %v143_v36  ;;  %v144_v37 = vsel %vm112_vm2, %v96_v34, %v128_v35 }
  0x3b   :  { %160 = vst [vmem:[%s346_s5 + $0x78] sm:$0xff] %v144_v37 }

// kernel: patch_discriminator_forward.9
= control target key start
LH: loop header
LB: loop body
LE: loop exit
PB: predicated region body
PF: predicated region fallthrough
CT: control target
= control target key end

     0   :  { %v394_v27 = vmov 0.0   ;;  %s540_s1 = inlined_call_operand.vmem [shape: bf16[128,128], index: 1, kind: input, shape index: {}]   ;;  %s541_s0 = inlined_call_operand.vmem [shape: bf16[128,128], index: 0, kind: input, shape index: {}]   ;;  %s542_s2 = inlined_call_operand.vmem [shape: f32[128,128], index: 2, kind: output, shape index: {0}]   ;;  %s543_s3 = inlined_call_operand.vmem [shape: f32[1,128], index: 3, kind: output, shape index: {1}]   ;;  %s544_s4 = inlined_call_operand.vmem [shape: f32[1,128], index: 4, kind: output, shape index: {2}]  }
   0x1   :  { %v368_v0 = vld [vmem:[%s540_s1 + $0x38] sm:$0xff]  ;;  %v367_v1 = vld [vmem:[%s540_s1 + $0x30] sm:$0xff]  ;;  %v366_v2 = vld [vmem:[%s540_s1 + $0x28] sm:$0xff]  ;;  %18 = vst [vmem:[%s543_s3] sm:$0x1] %v394_v27 }
   0x2   :  { %148 = vmatpush.bf16.msra.mxu0 %v368_v0  ;;  %369 = vmatpush.bf16.msra.mxu1 %v368_v0  ;;  %v365_v3 = vld [vmem:[%s540_s1 + $0x20] sm:$0xff]  ;;  %v364_v4 = vld [vmem:[%s540_s1 + $0x18] sm:$0xff]  ;;  %v363_v5 = vld [vmem:[%s540_s1 + $0x10] sm:$0xff]  ;;  %19 = vst [vmem:[%s544_s4] sm:$0x1] %v394_v27 }
   0x3   :  { %370 = vmatpush.bf16.msra.mxu2 %v368_v0  ;;  %371 = vmatpush.bf16.msra.mxu3 %v368_v0  ;;  %v362_v6 = vld [vmem:[%s540_s1 + $0x8] sm:$0xff]  ;;  %v361_v7 = vld [vmem:[%s540_s1] sm:$0xff]  ;;  %v355_v9 = vld [vmem:[%s541_s0 + $0x10] sm:$0xff] }
   0x4   :  { %v353_v8 = vld [vmem:[%s541_s0] sm:$0xff]  ;;  %v359_v11 = vld [vmem:[%s541_s0 + $0x30] sm:$0xff]  ;;  %v354_v12 = vld [vmem:[%s541_s0 + $0x8] sm:$0xff] }
   0x5   :  { %v357_v10 = vld [vmem:[%s541_s0 + $0x20] sm:$0xff]  ;;  %v356_v13 = vld [vmem:[%s541_s0 + $0x18] sm:$0xff]  ;;  %v358_v14 = vld [vmem:[%s541_s0 + $0x28] sm:$0xff] }
   0x6   :  { %149 = vmatpush.bf16.msra.mxu0 %v367_v1  ;;  %372 = vmatpush.bf16.msra.mxu1 %v367_v1  ;;  %v360_v15 = vld [vmem:[%s541_s0 + $0x38] sm:$0xff] }
   0x7   :  { %373 = vmatpush.bf16.msra.mxu2 %v367_v1  ;;  %374 = vmatpush.bf16.msra.mxu3 %v367_v1 }
   0x9   :  { %v237_v27 = vld [vmem:[%s544_s4] sm:$0x1] }
   0xa   :  { %150 = vmatpush.bf16.msra.mxu0 %v366_v2  ;;  %375 = vmatpush.bf16.msra.mxu1 %v366_v2 }
   0xb   :  { %376 = vmatpush.bf16.msra.mxu2 %v366_v2  ;;  %377 = vmatpush.bf16.msra.mxu3 %v366_v2 }
   0xe   :  { %151 = vmatpush.bf16.msra.mxu0 %v365_v3  ;;  %378 = vmatpush.bf16.msra.mxu1 %v365_v3 }
   0xf   :  { %379 = vmatpush.bf16.msra.mxu2 %v365_v3  ;;  %380 = vmatpush.bf16.msra.mxu3 %v365_v3 }
  0x12   :  { %152 = vmatpush.bf16.msra.mxu0 %v364_v4  ;;  %381 = vmatpush.bf16.msra.mxu1 %v364_v4 }
  0x13   :  { %382 = vmatpush.bf16.msra.mxu2 %v364_v4  ;;  %383 = vmatpush.bf16.msra.mxu3 %v364_v4 }
  0x16   :  { %153 = vmatpush.bf16.msra.mxu0 %v363_v5  ;;  %384 = vmatpush.bf16.msra.mxu1 %v363_v5 }
  0x17   :  { %385 = vmatpush.bf16.msra.mxu2 %v363_v5  ;;  %386 = vmatpush.bf16.msra.mxu3 %v363_v5 }
  0x1a   :  { %154 = vmatpush.bf16.msra.mxu0 %v362_v6  ;;  %387 = vmatpush.bf16.msra.mxu1 %v362_v6 }
  0x1b   :  { %388 = vmatpush.bf16.msra.mxu2 %v362_v6  ;;  %389 = vmatpush.bf16.msra.mxu3 %v362_v6 }
  0x1e   :  { %155 = vmatpush.bf16.msra.mxu0 %v361_v7  ;;  %390 = vmatpush.bf16.msra.mxu1 %v361_v7 }
  0x1f   :  { %391 = vmatpush.bf16.msra.mxu2 %v361_v7  ;;  %392 = vmatpush.bf16.msra.mxu3 %v361_v7 }
  0x21   :  { %156 = vmatmul.bf16.vlgmr.msra.gmra.mxu0 %v353_v8  ;;  %166 = vmatmul.bf16.vlgmr.msra.gmra.mxu1 %v355_v9 }
  0x22   :  { %176 = vmatmul.bf16.vlgmr.msra.gmra.mxu2 %v357_v10  ;;  %186 = vmatmul.bf16.vlgmr.msra.gmra.mxu3 %v359_v11 }
  0x31   :  { %161 = vmatmul.bf16.gmra.mxu0 %v354_v12  ;;  %171 = vmatmul.bf16.gmra.mxu1 %v356_v13 }
  0x32   :  { %181 = vmatmul.bf16.gmra.mxu2 %v358_v14  ;;  %191 = vmatmul.bf16.gmra.mxu3 %v360_v15 }
  0x9e   :  { %v157_v16 = vpop.f32.mrf.mxu0  ;;  %v167_v17 = vpop.f32.mrf.mxu1 }
  0x9f   :  { %197 = vst [vmem:[%s542_s2] sm:$0xff] %v157_v16  ;;  %v238_v28 = vmul.f32 %v157_v16, %v157_v16  ;;  %v242_v40 = vmul.f32 %v167_v17, %v167_v17 }
  0xa0   :  { %201 = vst [vmem:[%s542_s2 + $0x20] sm:$0xff] %v167_v17 }
  0xa5   :  { %v177_v18 = vpop.f32.mrf.mxu2  ;;  %v474_v19 = vpop.f32.mrf.mxu3 }
  0xa6   :  { %v159_v20 = vpop.f32.mrf.mxu0  ;;  %v169_v21 = vpop.f32.mrf.mxu1  ;;  %205 = vst [vmem:[%s542_s2 + $0x40] sm:$0xff] %v177_v18  ;;  %v246_v54 = vmul.f32 %v177_v18, %v177_v18  ;;  %v250_v2 = vmul.f32 %v474_v19, %v474_v19 }
  0xa7   :  { %198 = vst [vmem:[%s542_s2 + $0x8] sm:$0xff] %v159_v20  ;;  %v239_v26 = vmul.f32 %v159_v20, %v159_v20  ;;  %v214_v29 = vadd.f32 %v159_v20, %v157_v16  ;;  %v243_v43 = vmul.f32 %v169_v21, %v169_v21 }
  0xa8   :  { %202 = vst [vmem:[%s542_s2 + $0x28] sm:$0xff] %v169_v21 }
  0xa9   :  { %209 = vst [vmem:[%s542_s2 + $0x60] sm:$0xff] %v474_v19  ;;  %v254_v31 = vadd.f32 %v239_v26, %v238_v28 }
  0xad   :  { %v179_v22 = vpop.f32.mrf.mxu2  ;;  %v189_v23 = vpop.f32.mrf.mxu3 }
  0xae   :  { %v162_v24 = vpop.f32.mrf.mxu0  ;;  %v172_v25 = vpop.f32.mrf.mxu1  ;;  %206 = vst [vmem:[%s542_s2 + $0x48] sm:$0xff] %v179_v22  ;;  %v247_v57 = vmul.f32 %v179_v22, %v179_v22  ;;  %v251_v5 = vmul.f32 %v189_v23, %v189_v23 }
  0xaf   :  { %199 = vst [vmem:[%s542_s2 + $0x10] sm:$0xff] %v162_v24  ;;  %v240_v30 = vmul.f32 %v162_v24, %v162_v24  ;;  %v215_v32 = vadd.f32 %v214_v29, %v162_v24  ;;  %v244_v46 = vmul.f32 %v172_v25, %v172_v25 }
  0xb0   :  { %203 = vst [vmem:[%s542_s2 + $0x30] sm:$0xff] %v172_v25 }
  0xb1   :  { %210 = vst [vmem:[%s542_s2 + $0x68] sm:$0xff] %v189_v23  ;;  %v255_v37 = vadd.f32 %v254_v31, %v240_v30 }
  0xb5   :  { %v182_v33 = vpop.f32.mrf.mxu2  ;;  %v192_v34 = vpop.f32.mrf.mxu3 }
  0xb6   :  { %v164_v35 = vpop.f32.mrf.mxu0  ;;  %v174_v36 = vpop.f32.mrf.mxu1  ;;  %207 = vst [vmem:[%s542_s2 + $0x50] sm:$0xff] %v182_v33  ;;  %v248_v61 = vmul.f32 %v182_v33, %v182_v33  ;;  %v252_v9 = vmul.f32 %v192_v34, %v192_v34 }
  0xb7   :  { %200 = vst [vmem:[%s542_s2 + $0x18] sm:$0xff] %v164_v35  ;;  %v216_v38 = vadd.f32 %v215_v32, %v164_v35  ;;  %v241_v39 = vmul.f32 %v164_v35, %v164_v35  ;;  %v245_v52 = vmul.f32 %v174_v36, %v174_v36 }
  0xb8   :  { %204 = vst [vmem:[%s542_s2 + $0x38] sm:$0xff] %v174_v36 }
  0xb9   :  { %v217_v41 = vadd.f32 %v216_v38, %v167_v17  ;;  %v256_v42 = vadd.f32 %v255_v37, %v241_v39  ;;  %211 = vst [vmem:[%s542_s2 + $0x70] sm:$0xff] %v192_v34 }
  0xbb   :  { %v257_v44 = vadd.f32 %v256_v42, %v242_v40  ;;  %v218_v45 = vadd.f32 %v217_v41, %v169_v21 }
  0xbd   :  { %v219_v47 = vadd.f32 %v218_v45, %v172_v25  ;;  %v258_v48 = vadd.f32 %v257_v44, %v243_v43  ;;  %v184_v49 = vpop.f32.mrf.mxu2  ;;  %v194_v50 = vpop.f32.mrf.mxu3 }
  0xbe   :  { %208 = vst [vmem:[%s542_s2 + $0x58] sm:$0xff] %v184_v49  ;;  %v249_v1 = vmul.f32 %v184_v49, %v184_v49  ;;  %v253_v13 = vmul.f32 %v194_v50, %v194_v50 }
  0xbf   :  { %v220_v51 = vadd.f32 %v219_v47, %v174_v36  ;;  %v259_v53 = vadd.f32 %v258_v48, %v244_v46  ;;  %212 = vst [vmem:[%s542_s2 + $0x78] sm:$0xff] %v194_v50 }
  0xc1   :  { %v221_v55 = vadd.f32 %v220_v51, %v177_v18  ;;  %v260_v56 = vadd.f32 %v259_v53, %v245_v52 }
  0xc3   :  { %v261_v58 = vadd.f32 %v260_v56, %v246_v54  ;;  %v222_v59 = vadd.f32 %v221_v55, %v179_v22 }
  0xc5   :  { %v223_v60 = vadd.f32 %v222_v59, %v182_v33  ;;  %v262_v62 = vadd.f32 %v261_v58, %v247_v57 }
  0xc7   :  { %v263_v63 = vadd.f32 %v262_v62, %v248_v61  ;;  %v224_v0 = vadd.f32 %v223_v60, %v184_v49 }
  0xc9   :  { %v225_v3 = vadd.f32 %v224_v0, %v474_v19  ;;  %v264_v4 = vadd.f32 %v263_v63, %v249_v1 }
  0xcb   :  { %v265_v6 = vadd.f32 %v264_v4, %v250_v2  ;;  %v226_v7 = vadd.f32 %v225_v3, %v189_v23  ;;  %v213_v23 = vld [vmem:[%s543_s3] sm:$0x1] }
  0xcd   :  { %v227_v8 = vadd.f32 %v226_v7, %v192_v34  ;;  %v266_v10 = vadd.f32 %v265_v6, %v251_v5 }
  0xcf   :  { %v267_v11 = vadd.f32 %v266_v10, %v252_v9  ;;  %v228_v12 = vadd.f32 %v227_v8, %v194_v50 }
  0xd1   :  { %v229_v14 = vrot.slane %v228_v12, 4  ;;  %v268_v15 = vadd.f32 %v267_v11, %v253_v13 }
  0xd3   :  { %v230_v16 = vadd.f32 %v229_v14, %v228_v12  ;;  %v269_v17 = vrot.slane %v268_v15, 4 }
  0xd5   :  { %v231_v18 = vrot.slane %v230_v16, 2  ;;  %v270_v20 = vadd.f32 %v269_v17, %v268_v15 }
  0xd7   :  { %v232_v21 = vadd.f32 %v231_v18, %v230_v16  ;;  %v271_v22 = vrot.slane %v270_v20, 2 }
  0xd9   :  { %v233_v24 = vrot.slane %v232_v21, 1  ;;  %v272_v19 = vadd.f32 %v271_v22, %v270_v20 }
  0xdb   :  { %v234_v25 = vadd.f32 %v233_v24, %v232_v21  ;;  %v273_v26 = vrot.slane %v272_v19, 1 }
  0xdd   :  { %v235_v28 = vadd.f32 %v234_v25, %v213_v23  ;;  %v274_v29 = vadd.f32 %v273_v26, %v272_v19 }
  0xdf   :  { %236 = vst [vmem:[%s543_s3] sm:$0x1] %v235_v28  ;;  %v275_v30 = vadd.f32 %v274_v29, %v237_v27 }
  0xe1   :  { %276 = vst [vmem:[%s544_s4] sm:$0x1] %v275_v30 }

// kernel: patch_discriminator_forward.12
= control target key start
LH: loop header
LB: loop body
LE: loop exit
PB: predicated region body
PF: predicated region fallthrough
CT: control target
= control target key end

     0   :  { %s149_s1 = inlined_call_operand.vmem [shape: f32[1,128], index: 1, kind: input, shape index: {}]   ;;  %s150_s2 = inlined_call_operand.vmem [shape: f32[1,128], index: 2, kind: input, shape index: {}]   ;;  %s151_s3 = inlined_call_operand.vmem [shape: f32[1,128], index: 3, kind: input, shape index: {}]   ;;  %s152_s0 = inlined_call_operand.vmem [shape: f32[32,128], index: 0, kind: input, shape index: {}]   ;;  %s153_s4 = inlined_call_operand.vmem [shape: f32[1,128], index: 4, kind: input, shape index: {}]   ;;  %s154_s5 = inlined_call_operand.vmem [shape: f32[32,128], index: 5, kind: output, shape index: {}]  }
   0x1   :  { %v24_v0 = vld [vmem:[%s149_s1] sm:$0x1]  ;;  %v21_v19 = vld [vmem:[%s152_s0 + $0x8] sm:$0xff]  ;;  %v22_v20 = vld [vmem:[%s152_s0 + $0x10] sm:$0xff] }
   0x2   :  { %v26_v1 = vld [vmem:[%s150_s2] sm:$0x1]  ;;  %v25_v2 = vmul.f32 0.03125, %v24_v0  ;;  %v23_v23 = vld [vmem:[%s152_s0 + $0x18] sm:$0xff] }
   0x3   :  { %v27_v3 = vmul.f32 0.03125, %v26_v1  ;;  %v31_v13 = vld [vmem:[%s151_s3] sm:$0x1] }
   0x4   :  { %v28_v4 = vmul.f32 %v25_v2, %v25_v2  ;;  %v20_v16 = vld [vmem:[%s152_s0] sm:$0xff] }
   0x5   :  { %v44_v18 = vld [vmem:[%s153_s4] sm:$0x1] }
   0x6   :  { %v29_v5 = vsub.f32 %v27_v3, %v28_v4 }
   0x8   :  { %v30_v6 = vmax.f32 %v29_v5, 0.0 }
   0xa   :  { %v32_v7 = vadd.f32 1e-05, %v30_v6 }
   0xc   :  { %81 = vrsqrt.f32 %v32_v7  ;;  %vm39_vm0 = vweird.f32 %v32_v7 }
  0x12   :  { %v82_v8 = vpop.eup %81 }
  0x13   :  { %v34_v9 = vmul.f32 %v82_v8, %v32_v7  ;;  %vm40_vm1 = vweird.f32 %v82_v8 }
  0x14   :  { %vm41_vm2 = vmor %vm39_vm0, %vm40_vm1 }
  0x15   :  { %v35_v10 = vmul.f32 %v82_v8, %v34_v9 }
  0x17   :  { %v36_v11 = vmul.f32 0.5, %v35_v10 }
  0x19   :  { %v37_v12 = vsub.f32 1.5, %v36_v11 }
  0x1b   :  { %v38_v14 = vmul.f32 %v82_v8, %v37_v12 }
  0x1d   :  { %v42_v15 = vsel %vm41_vm2, %v82_v8, %v38_v14 }
  0x1e   :  { %v43_v17 = vmul.f32 %v42_v15, %v31_v13 }
  0x20   :  { %v45_v21 = vmul.f32 %v43_v17, %v25_v2  ;;  %v48_v22 = vperm.slane %v43_v17, 0 }
  0x22   :  { %v46_v24 = vsub.f32 %v44_v18, %v45_v21  ;;  %v50_v25 = vmul.f32 %v48_v22, %v20_v16  ;;  %v51_v26 = vmul.f32 %v48_v22, %v21_v19  ;;  %v52_v27 = vmul.f32 %v48_v22, %v22_v20 }
  0x23   :  { %v53_v28 = vmul.f32 %v48_v22, %v23_v23 }
  0x24   :  { %v55_v29 = vperm.slane %v46_v24, 0 }
  0x26   :  { %v57_v30 = vadd.f32 %v55_v29, %v50_v25  ;;  %v58_v31 = vadd.f32 %v55_v29, %v51_v26  ;;  %v59_v32 = vadd.f32 %v55_v29, %v52_v27  ;;  %v60_v33 = vadd.f32 %v55_v29, %v53_v28 }
  0x28   :  { %vm61_vm3 = vcmp.gt.f32.partialorder %v57_v30, 0.0  ;;  %v65_v34 = vmul.f32 0.2, %v57_v30  ;;  %vm62_vm4 = vcmp.gt.f32.partialorder %v58_v31, 0.0  ;;  %v66_v35 = vmul.f32 0.2, %v58_v31 }
  0x29   :  { %vm63_vm5 = vcmp.gt.f32.partialorder %v59_v32, 0.0  ;;  %v67_v36 = vmul.f32 0.2, %v59_v32  ;;  %vm64_vm6 = vcmp.gt.f32.partialorder %v60_v33, 0.0  ;;  %v68_v37 = vmul.f32 0.2, %v60_v33 }
  0x2a   :  { %v69_v38 = vsel %vm61_vm3, %v57_v30, %v65_v34  ;;  %v70_v39 = vsel %vm62_vm4, %v58_v31, %v66_v35 }
  0x2b   :  { %73 = vst [vmem:[%s154_s5] sm:$0xff] %v69_v38  ;;  %v71_v40 = vsel %vm63_vm5, %v59_v32, %v67_v36  ;;  %v72_v41 = vsel %vm64_vm6, %v60_v33, %v68_v37 }
  0x2c   :  { %74 = vst [vmem:[%s154_s5 + $0x8] sm:$0xff] %v70_v39 }
  0x2d   :  { %75 = vst [vmem:[%s154_s5 + $0x10] sm:$0xff] %v71_v40 }
  0x2e   :  { %76 = vst [vmem:[%s154_s5 + $0x18] sm:$0xff] %v72_v41 }

// kernel: patch_discriminator_forward.11
= control target key start
LH: loop header
LB: loop body
LE: loop exit
PB: predicated region body
PF: predicated region fallthrough
CT: control target
= control target key end

     0   :  { %v371_v28 = vmov 0.0   ;;  %s499_s1 = inlined_call_operand.vmem [shape: bf16[256,128], index: 1, kind: input, shape index: {}]   ;;  %s500_s0 = inlined_call_operand.vmem [shape: bf16[32,256], index: 0, kind: input, shape index: {}]   ;;  %s501_s3 = inlined_call_operand.vmem [shape: f32[1,128], index: 3, kind: output, shape index: {1}]   ;;  %s502_s4 = inlined_call_operand.vmem [shape: f32[1,128], index: 4, kind: output, shape index: {2}]   ;;  %s503_s2 = inlined_call_operand.vmem [shape: f32[32,128], index: 2, kind: output, shape index: {0}]  }
   0x1   :  { %v345_v0 = vld [vmem:[%s499_s1 + $0x38] sm:$0xff]  ;;  %v344_v2 = vld [vmem:[%s499_s1 + $0x30] sm:$0xff]  ;;  %v343_v4 = vld [vmem:[%s499_s1 + $0x28] sm:$0xff]  ;;  %18 = vst [vmem:[%s501_s3] sm:$0x1] %v371_v28 }
   0x2   :  { %v353_v1 = vld [vmem:[%s499_s1 + $0x78] sm:$0xff]  ;;  %172 = vmatpush.bf16.msra.mxu0 %v345_v0  ;;  %354 = vmatpush.bf16.msra.mxu2 %v345_v0  ;;  %v352_v3 = vld [vmem:[%s499_s1 + $0x70] sm:$0xff]  ;;  %v351_v5 = vld [vmem:[%s499_s1 + $0x68] sm:$0xff]  ;;  %19 = vst [vmem:[%s502_s4] sm:$0x1] %v371_v28 }
   0x3   :  { %191 = vmatpush.bf16.msra.mxu1 %v353_v1  ;;  %362 = vmatpush.bf16.msra.mxu3 %v353_v1  ;;  %v342_v6 = vld [vmem:[%s499_s1 + $0x20] sm:$0xff]  ;;  %v341_v8 = vld [vmem:[%s499_s1 + $0x18] sm:$0xff]  ;;  %v340_v10 = vld [vmem:[%s499_s1 + $0x10] sm:$0xff] }
   0x4   :  { %v350_v7 = vld [vmem:[%s499_s1 + $0x60] sm:$0xff]  ;;  %v349_v9 = vld [vmem:[%s499_s1 + $0x58] sm:$0xff]  ;;  %v348_v11 = vld [vmem:[%s499_s1 + $0x50] sm:$0xff] }
   0x5   :  { %v339_v12 = vld [vmem:[%s499_s1 + $0x8] sm:$0xff]  ;;  %v338_v14 = vld [vmem:[%s499_s1] sm:$0xff]  ;;  %v264_v18 = vld [vmem:[%s500_s0 + $0x10] sm:$0xf] }
   0x6   :  { %173 = vmatpush.bf16.msra.mxu0 %v344_v2  ;;  %355 = vmatpush.bf16.msra.mxu2 %v344_v2  ;;  %v347_v13 = vld [vmem:[%s499_s1 + $0x48] sm:$0xff]  ;;  %v346_v15 = vld [vmem:[%s499_s1 + $0x40] sm:$0xff]  ;;  %v337_v19 = vld [vmem:[%s500_s0 + $0x14] sm:$0xf0] }
   0x7   :  { %192 = vmatpush.bf16.msra.mxu1 %v352_v3  ;;  %363 = vmatpush.bf16.msra.mxu3 %v352_v3  ;;  %v256_v16 = vld [vmem:[%s500_s0] sm:$0xf]  ;;  %v335_v17 = vld [vmem:[%s500_s0 + $0x4] sm:$0xf0]  ;;  %v334_v20 = vld [vmem:[%s500_s0 + $0x4] sm:$0xf]  ;;  %v265_v25 = vor.u32 %v337_v19, %v264_v18 }
   0x8   :  { %v258_v21 = vld [vmem:[%s500_s0 + $0x8] sm:$0xf0]  ;;  %v336_v22 = vld [vmem:[%s500_s0 + $0x14] sm:$0xf]  ;;  %v266_v23 = vld [vmem:[%s500_s0 + $0x18] sm:$0xf0]  ;;  %v257_v24 = vor.u32 %v335_v17, %v256_v16 }
   0x9   :  { %v261_v26 = vor.u32 %v334_v20, %v258_v21  ;;  %v269_v27 = vor.u32 %v336_v22, %v266_v23  ;;  %v214_v60 = vld [vmem:[%s501_s3] sm:$0x1] }
   0xa   :  { %174 = vmatpush.bf16.msra.mxu0 %v343_v4  ;;  %356 = vmatpush.bf16.msra.mxu2 %v343_v4  ;;  %v226_v63 = vld [vmem:[%s502_s4] sm:$0x1] }
   0xb   :  { %193 = vmatpush.bf16.msra.mxu1 %v351_v5  ;;  %364 = vmatpush.bf16.msra.mxu3 %v351_v5 }
   0xe   :  { %175 = vmatpush.bf16.msra.mxu0 %v342_v6  ;;  %357 = vmatpush.bf16.msra.mxu2 %v342_v6 }
   0xf   :  { %194 = vmatpush.bf16.msra.mxu1 %v350_v7  ;;  %365 = vmatpush.bf16.msra.mxu3 %v350_v7 }
  0x12   :  { %176 = vmatpush.bf16.msra.mxu0 %v341_v8  ;;  %358 = vmatpush.bf16.msra.mxu2 %v341_v8 }
  0x13   :  { %195 = vmatpush.bf16.msra.mxu1 %v349_v9  ;;  %366 = vmatpush.bf16.msra.mxu3 %v349_v9 }
  0x16   :  { %177 = vmatpush.bf16.msra.mxu0 %v340_v10  ;;  %359 = vmatpush.bf16.msra.mxu2 %v340_v10 }
  0x17   :  { %196 = vmatpush.bf16.msra.mxu1 %v348_v11  ;;  %367 = vmatpush.bf16.msra.mxu3 %v348_v11 }
  0x1a   :  { %178 = vmatpush.bf16.msra.mxu0 %v339_v12  ;;  %360 = vmatpush.bf16.msra.mxu2 %v339_v12 }
  0x1b   :  { %197 = vmatpush.bf16.msra.mxu1 %v347_v13  ;;  %368 = vmatpush.bf16.msra.mxu3 %v347_v13 }
  0x1e   :  { %179 = vmatpush.bf16.msra.mxu0 %v338_v14  ;;  %361 = vmatpush.bf16.msra.mxu2 %v338_v14 }
  0x1f   :  { %198 = vmatpush.bf16.msra.mxu1 %v346_v15  ;;  %369 = vmatpush.bf16.msra.mxu3 %v346_v15 }
  0x21   :  { %180 = vmatmul.bf16.vlgmr.msra.gmra.mxu0 %v257_v24  ;;  %185 = vmatmul.bf16.vlgmr.msra.gmra.mxu2 %v265_v25 }
  0x22   :  { %199 = vmatmul.bf16.vlgmr.msra.gmra.mxu1 %v261_v26  ;;  %204 = vmatmul.bf16.vlgmr.msra.gmra.mxu3 %v269_v27 }
  0x9e   :  { %v181_v29 = vpop.f32.mrf.mxu0 }
  0x9f   :  { %v200_v30 = vpop.f32.mrf.mxu1 }
  0xa0   :  { %v201_v31 = vadd.f32 %v200_v30, %v181_v29 }
  0xa2   :  { %210 = vst [vmem:[%s503_s2] sm:$0xff] %v201_v31  ;;  %v227_v38 = vmul.f32 %v201_v31, %v201_v31 }
  0xa4   :  { %v186_v32 = vpop.f32.mrf.mxu2 }
  0xa5   :  { %v205_v33 = vpop.f32.mrf.mxu3 }
  0xa6   :  { %v206_v34 = vadd.f32 %v205_v33, %v186_v32  ;;  %v183_v35 = vpop.f32.mrf.mxu0 }
  0xa7   :  { %v202_v36 = vpop.f32.mrf.mxu1 }
  0xa8   :  { %212 = vst [vmem:[%s503_s2 + $0x10] sm:$0xff] %v206_v34  ;;  %v203_v37 = vadd.f32 %v202_v36, %v183_v35  ;;  %v229_v44 = vmul.f32 %v206_v34, %v206_v34 }
  0xaa   :  { %211 = vst [vmem:[%s503_s2 + $0x8] sm:$0xff] %v203_v37  ;;  %v215_v39 = vadd.f32 %v203_v37, %v201_v31  ;;  %v228_v40 = vmul.f32 %v203_v37, %v203_v37 }
  0xac   :  { %v231_v41 = vadd.f32 %v228_v40, %v227_v38  ;;  %v188_v42 = vpop.f32.mrf.mxu2  ;;  %v216_v46 = vadd.f32 %v215_v39, %v206_v34 }
  0xad   :  { %v207_v43 = vpop.f32.mrf.mxu3 }
  0xae   :  { %v208_v45 = vadd.f32 %v207_v43, %v188_v42  ;;  %v232_v49 = vadd.f32 %v231_v41, %v229_v44 }
  0xb0   :  { %213 = vst [vmem:[%s503_s2 + $0x18] sm:$0xff] %v208_v45  ;;  %v217_v47 = vadd.f32 %v216_v46, %v208_v45  ;;  %v230_v48 = vmul.f32 %v208_v45, %v208_v45 }
  0xb2   :  { %v218_v50 = vrot.slane %v217_v47, 4  ;;  %v233_v51 = vadd.f32 %v232_v49, %v230_v48 }
  0xb4   :  { %v219_v52 = vadd.f32 %v218_v50, %v217_v47  ;;  %v234_v53 = vrot.slane %v233_v51, 4 }
  0xb6   :  { %v220_v54 = vrot.slane %v219_v52, 2  ;;  %v235_v55 = vadd.f32 %v234_v53, %v233_v51 }
  0xb8   :  { %v221_v56 = vadd.f32 %v220_v54, %v219_v52  ;;  %v236_v57 = vrot.slane %v235_v55, 2 }
  0xba   :  { %v222_v58 = vrot.slane %v221_v56, 1  ;;  %v237_v59 = vadd.f32 %v236_v57, %v235_v55 }
  0xbc   :  { %v223_v61 = vadd.f32 %v222_v58, %v221_v56  ;;  %v238_v62 = vrot.slane %v237_v59, 1 }
  0xbe   :  { %v224_v0 = vadd.f32 %v223_v61, %v214_v60  ;;  %v239_v1 = vadd.f32 %v238_v62, %v237_v59 }
  0xc0   :  { %225 = vst [vmem:[%s501_s3] sm:$0x1] %v224_v0  ;;  %v240_v2 = vadd.f32 %v239_v1, %v226_v63 }
  0xc2   :  { %241 = vst [vmem:[%s502_s4] sm:$0x1] %v240_v2 }

// kernel: patch_discriminator_forward.14
= control target key start
LH: loop header
LB: loop body
LE: loop exit
PB: predicated region body
PF: predicated region fallthrough
CT: control target
= control target key end

     0   :  { %s149_s1 = inlined_call_operand.vmem [shape: f32[1,128], index: 1, kind: input, shape index: {}]   ;;  %s150_s2 = inlined_call_operand.vmem [shape: f32[1,128], index: 2, kind: input, shape index: {}]   ;;  %s151_s3 = inlined_call_operand.vmem [shape: f32[1,128], index: 3, kind: input, shape index: {}]   ;;  %s152_s0 = inlined_call_operand.vmem [shape: f32[32,128], index: 0, kind: input, shape index: {}]   ;;  %s153_s4 = inlined_call_operand.vmem [shape: f32[1,128], index: 4, kind: input, shape index: {}]   ;;  %s154_s5 = inlined_call_operand.vmem [shape: f32[32,128], index: 5, kind: output, shape index: {}]  }
   0x1   :  { %v24_v0 = vld [vmem:[%s149_s1] sm:$0x1]  ;;  %v21_v19 = vld [vmem:[%s152_s0 + $0x8] sm:$0xff]  ;;  %v22_v20 = vld [vmem:[%s152_s0 + $0x10] sm:$0xff] }
   0x2   :  { %v26_v1 = vld [vmem:[%s150_s2] sm:$0x1]  ;;  %v25_v2 = vmul.f32 0.055555556, %v24_v0  ;;  %v23_v23 = vld [vmem:[%s152_s0 + $0x18] sm:$0xff] }
   0x3   :  { %v27_v3 = vmul.f32 0.055555556, %v26_v1  ;;  %v31_v13 = vld [vmem:[%s151_s3] sm:$0x1] }
   0x4   :  { %v28_v4 = vmul.f32 %v25_v2, %v25_v2  ;;  %v20_v16 = vld [vmem:[%s152_s0] sm:$0xff] }
   0x5   :  { %v44_v18 = vld [vmem:[%s153_s4] sm:$0x1] }
   0x6   :  { %v29_v5 = vsub.f32 %v27_v3, %v28_v4 }
   0x8   :  { %v30_v6 = vmax.f32 %v29_v5, 0.0 }
   0xa   :  { %v32_v7 = vadd.f32 1e-05, %v30_v6 }
   0xc   :  { %81 = vrsqrt.f32 %v32_v7  ;;  %vm39_vm0 = vweird.f32 %v32_v7 }
  0x12   :  { %v82_v8 = vpop.eup %81 }
  0x13   :  { %v34_v9 = vmul.f32 %v82_v8, %v32_v7  ;;  %vm40_vm1 = vweird.f32 %v82_v8 }
  0x14   :  { %vm41_vm2 = vmor %vm39_vm0, %vm40_vm1 }
  0x15   :  { %v35_v10 = vmul.f32 %v82_v8, %v34_v9 }
  0x17   :  { %v36_v11 = vmul.f32 0.5, %v35_v10 }
  0x19   :  { %v37_v12 = vsub.f32 1.5, %v36_v11 }
  0x1b   :  { %v38_v14 = vmul.f32 %v82_v8, %v37_v12 }
  0x1d   :  { %v42_v15 = vsel %vm41_vm2, %v82_v8, %v38_v14 }
  0x1e   :  { %v43_v17 = vmul.f32 %v42_v15, %v31_v13 }
  0x20   :  { %v45_v21 = vmul.f32 %v43_v17, %v25_v2  ;;  %v48_v22 = vperm.slane %v43_v17, 0 }
  0x22   :  { %v46_v24 = vsub.f32 %v44_v18, %v45_v21  ;;  %v50_v25 = vmul.f32 %v48_v22, %v20_v16  ;;  %v51_v26 = vmul.f32 %v48_v22, %v21_v19  ;;  %v52_v27 = vmul.f32 %v48_v22, %v22_v20 }
  0x23   :  { %v53_v28 = vmul.f32 %v48_v22, %v23_v23 }
  0x24   :  { %v55_v29 = vperm.slane %v46_v24, 0 }
  0x26   :  { %v57_v30 = vadd.f32 %v55_v29, %v50_v25  ;;  %v58_v31 = vadd.f32 %v55_v29, %v51_v26  ;;  %v59_v32 = vadd.f32 %v55_v29, %v52_v27  ;;  %v60_v33 = vadd.f32 %v55_v29, %v53_v28 }
  0x28   :  { %vm61_vm3 = vcmp.gt.f32.partialorder %v57_v30, 0.0  ;;  %v65_v34 = vmul.f32 0.2, %v57_v30  ;;  %vm62_vm4 = vcmp.gt.f32.partialorder %v58_v31, 0.0  ;;  %v66_v35 = vmul.f32 0.2, %v58_v31 }
  0x29   :  { %vm63_vm5 = vcmp.gt.f32.partialorder %v59_v32, 0.0  ;;  %v67_v36 = vmul.f32 0.2, %v59_v32  ;;  %vm64_vm6 = vcmp.gt.f32.partialorder %v60_v33, 0.0  ;;  %v68_v37 = vmul.f32 0.2, %v60_v33 }
  0x2a   :  { %v69_v38 = vsel %vm61_vm3, %v57_v30, %v65_v34  ;;  %v70_v39 = vsel %vm62_vm4, %v58_v31, %v66_v35 }
  0x2b   :  { %73 = vst [vmem:[%s154_s5] sm:$0xff] %v69_v38  ;;  %v71_v40 = vsel %vm63_vm5, %v59_v32, %v67_v36  ;;  %v72_v41 = vsel %vm64_vm6, %v60_v33, %v68_v37 }
  0x2c   :  { %74 = vst [vmem:[%s154_s5 + $0x8] sm:$0xff] %v70_v39 }
  0x2d   :  { %75 = vst [vmem:[%s154_s5 + $0x10] sm:$0xff] %v71_v40 }
  0x2e   :  { %76 = vst [vmem:[%s154_s5 + $0x18] sm:$0xff] %v72_v41 }

// kernel: patch_discriminator_forward.13
= control target key start
LH: loop header
LB: loop body
LE: loop exit
PB: predicated region body
PF: predicated region fallthrough
CT: control target
= control target key end

     0   :  { %v645_v58 = vmov 0.0   ;;  %s845_s1 = inlined_call_operand.vmem [shape: bf16[512,128], index: 1, kind: input, shape index: {}]   ;;  %s846_s0 = inlined_call_operand.vmem [shape: bf16[32,512], index: 0, kind: input, shape index: {}]   ;;  %s847_s3 = inlined_call_operand.vmem [shape: f32[1,128], index: 3, kind: output, shape index: {1}]   ;;  %s848_s4 = inlined_call_operand.vmem [shape: f32[1,128], index: 4, kind: output, shape index: {2}]   ;;  %s849_s2 = inlined_call_operand.vmem [shape: f32[32,128], index: 2, kind: output, shape index: {0}]  }
   0x1   :  { %v619_v0 = vld [vmem:[%s845_s1 + $0x38] sm:$0xff]  ;;  %v618_v4 = vld [vmem:[%s845_s1 + $0x30] sm:$0xff]  ;;  %v617_v8 = vld [vmem:[%s845_s1 + $0x28] sm:$0xff]  ;;  %18 = vst [vmem:[%s847_s3] sm:$0x1] %v645_v58 }
   0x2   :  { %v627_v1 = vld [vmem:[%s845_s1 + $0x78] sm:$0xff]  ;;  %324 = vmatpush.bf16.msra.mxu0 %v619_v0  ;;  %v626_v5 = vld [vmem:[%s845_s1 + $0x70] sm:$0xff]  ;;  %v625_v9 = vld [vmem:[%s845_s1 + $0x68] sm:$0xff]  ;;  %19 = vst [vmem:[%s848_s4] sm:$0x1] %v645_v58 }
   0x3   :  { %v635_v2 = vld [vmem:[%s845_s1 + $0xb8] sm:$0xff]  ;;  %343 = vmatpush.bf16.msra.mxu1 %v627_v1  ;;  %v634_v6 = vld [vmem:[%s845_s1 + $0xb0] sm:$0xff]  ;;  %v633_v10 = vld [vmem:[%s845_s1 + $0xa8] sm:$0xff] }
   0x4   :  { %v643_v3 = vld [vmem:[%s845_s1 + $0xf8] sm:$0xff]  ;;  %362 = vmatpush.bf16.msra.mxu2 %v635_v2  ;;  %v642_v7 = vld [vmem:[%s845_s1 + $0xf0] sm:$0xff]  ;;  %v641_v11 = vld [vmem:[%s845_s1 + $0xe8] sm:$0xff] }
   0x5   :  { %381 = vmatpush.bf16.msra.mxu3 %v643_v3  ;;  %v616_v12 = vld [vmem:[%s845_s1 + $0x20] sm:$0xff]  ;;  %v615_v16 = vld [vmem:[%s845_s1 + $0x18] sm:$0xff]  ;;  %v614_v20 = vld [vmem:[%s845_s1 + $0x10] sm:$0xff] }
   0x6   :  { %325 = vmatpush.bf16.msra.mxu0 %v618_v4  ;;  %v624_v13 = vld [vmem:[%s845_s1 + $0x60] sm:$0xff]  ;;  %v623_v17 = vld [vmem:[%s845_s1 + $0x58] sm:$0xff]  ;;  %v622_v21 = vld [vmem:[%s845_s1 + $0x50] sm:$0xff] }
   0x7   :  { %344 = vmatpush.bf16.msra.mxu1 %v626_v5  ;;  %v632_v14 = vld [vmem:[%s845_s1 + $0xa0] sm:$0xff]  ;;  %v631_v18 = vld [vmem:[%s845_s1 + $0x98] sm:$0xff]  ;;  %v630_v22 = vld [vmem:[%s845_s1 + $0x90] sm:$0xff] }
   0x8   :  { %363 = vmatpush.bf16.msra.mxu2 %v634_v6  ;;  %v640_v15 = vld [vmem:[%s845_s1 + $0xe0] sm:$0xff]  ;;  %v639_v19 = vld [vmem:[%s845_s1 + $0xd8] sm:$0xff]  ;;  %v638_v23 = vld [vmem:[%s845_s1 + $0xd0] sm:$0xff] }
   0x9   :  { %382 = vmatpush.bf16.msra.mxu3 %v642_v7  ;;  %v613_v24 = vld [vmem:[%s845_s1 + $0x8] sm:$0xff]  ;;  %v612_v28 = vld [vmem:[%s845_s1] sm:$0xff]  ;;  %v606_v33 = vld [vmem:[%s846_s0 + $0xc] sm:$0xf0] }
   0xa   :  { %326 = vmatpush.bf16.msra.mxu0 %v617_v8  ;;  %v621_v25 = vld [vmem:[%s845_s1 + $0x48] sm:$0xff]  ;;  %v620_v29 = vld [vmem:[%s845_s1 + $0x40] sm:$0xff]  ;;  %v448_v35 = vld [vmem:[%s846_s0 + $0x10] sm:$0xf0] }
   0xb   :  { %345 = vmatpush.bf16.msra.mxu1 %v625_v9  ;;  %v629_v26 = vld [vmem:[%s845_s1 + $0x88] sm:$0xff]  ;;  %v628_v30 = vld [vmem:[%s845_s1 + $0x80] sm:$0xff]  ;;  %v607_v37 = vld [vmem:[%s846_s0 + $0x14] sm:$0xf0] }
   0xc   :  { %364 = vmatpush.bf16.msra.mxu2 %v633_v10  ;;  %v637_v27 = vld [vmem:[%s845_s1 + $0xc8] sm:$0xff]  ;;  %v636_v31 = vld [vmem:[%s845_s1 + $0xc0] sm:$0xff]  ;;  %v456_v39 = vld [vmem:[%s846_s0 + $0x18] sm:$0xf0] }
   0xd   :  { %383 = vmatpush.bf16.msra.mxu3 %v641_v11  ;;  %v446_v32 = vld [vmem:[%s846_s0] sm:$0xf]  ;;  %v604_v34 = vld [vmem:[%s846_s0 + $0x4] sm:$0xf]  ;;  %v454_v36 = vld [vmem:[%s846_s0 + $0x8] sm:$0xf] }
   0xe   :  { %327 = vmatpush.bf16.msra.mxu0 %v616_v12  ;;  %v605_v38 = vld [vmem:[%s846_s0 + $0xc] sm:$0xf]  ;;  %v447_v40 = vor.u32 %v606_v33, %v446_v32  ;;  %v451_v41 = vor.u32 %v604_v34, %v448_v35  ;;  %v455_v42 = vor.u32 %v607_v37, %v454_v36  ;;  %v462_v44 = vld [vmem:[%s846_s0 + $0x20] sm:$0xf]  ;;  %v610_v45 = vld [vmem:[%s846_s0 + $0x2c] sm:$0xf0] }
   0xf   :  { %346 = vmatpush.bf16.msra.mxu1 %v624_v13  ;;  %v459_v43 = vor.u32 %v605_v38, %v456_v39  ;;  %v608_v46 = vld [vmem:[%s846_s0 + $0x24] sm:$0xf]  ;;  %v464_v47 = vld [vmem:[%s846_s0 + $0x30] sm:$0xf0]  ;;  %v470_v48 = vld [vmem:[%s846_s0 + $0x28] sm:$0xf]  ;;  %v463_v52 = vor.u32 %v610_v45, %v462_v44 }
  0x10   :  { %365 = vmatpush.bf16.msra.mxu2 %v632_v14  ;;  %v611_v49 = vld [vmem:[%s846_s0 + $0x34] sm:$0xf0]  ;;  %v609_v50 = vld [vmem:[%s846_s0 + $0x2c] sm:$0xf]  ;;  %v472_v51 = vld [vmem:[%s846_s0 + $0x38] sm:$0xf0]  ;;  %v467_v53 = vor.u32 %v608_v46, %v464_v47 }
  0x11   :  { %384 = vmatpush.bf16.msra.mxu3 %v640_v15  ;;  %v471_v54 = vor.u32 %v611_v49, %v470_v48  ;;  %v475_v55 = vor.u32 %v609_v50, %v472_v51 }
  0x12   :  { %328 = vmatpush.bf16.msra.mxu0 %v615_v16 }
  0x13   :  { %347 = vmatpush.bf16.msra.mxu1 %v623_v17 }
  0x14   :  { %366 = vmatpush.bf16.msra.mxu2 %v631_v18 }
  0x15   :  { %385 = vmatpush.bf16.msra.mxu3 %v639_v19 }
  0x16   :  { %329 = vmatpush.bf16.msra.mxu0 %v614_v20 }
  0x17   :  { %348 = vmatpush.bf16.msra.mxu1 %v622_v21 }
  0x18   :  { %367 = vmatpush.bf16.msra.mxu2 %v630_v22 }
  0x19   :  { %386 = vmatpush.bf16.msra.mxu3 %v638_v23 }
  0x1a   :  { %330 = vmatpush.bf16.msra.mxu0 %v613_v24 }
  0x1b   :  { %349 = vmatpush.bf16.msra.mxu1 %v621_v25 }
  0x1c   :  { %368 = vmatpush.bf16.msra.mxu2 %v629_v26 }
  0x1d   :  { %387 = vmatpush.bf16.msra.mxu3 %v637_v27 }
  0x1e   :  { %331 = vmatpush.bf16.msra.mxu0 %v612_v28 }
  0x1f   :  { %350 = vmatpush.bf16.msra.mxu1 %v620_v29 }
  0x20   :  { %369 = vmatpush.bf16.msra.mxu2 %v628_v30 }
  0x21   :  { %388 = vmatpush.bf16.msra.mxu3 %v636_v31  ;;  %332 = vmatmul.bf16.vlgmr.msra.gmra.mxu0 %v447_v40  ;;  %v404_v40 = vld [vmem:[%s847_s3] sm:$0x1] }
  0x22   :  { %351 = vmatmul.bf16.vlgmr.msra.gmra.mxu1 %v451_v41 }
  0x23   :  { %370 = vmatmul.bf16.vlgmr.msra.gmra.mxu2 %v455_v42 }
  0x24   :  { %389 = vmatmul.bf16.vlgmr.msra.gmra.mxu3 %v459_v43  ;;  %v416_v43 = vld [vmem:[%s848_s4] sm:$0x1] }
  0x31   :  { %337 = vmatmul.bf16.gmra.mxu0 %v463_v52 }
  0x32   :  { %356 = vmatmul.bf16.gmra.mxu1 %v467_v53 }
  0x33   :  { %375 = vmatmul.bf16.gmra.mxu2 %v471_v54 }
  0x34   :  { %394 = vmatmul.bf16.gmra.mxu3 %v475_v55 }
  0x9e   :  { %v333_v56 = vpop.f32.mrf.mxu0 }
  0x9f   :  { %v352_v57 = vpop.f32.mrf.mxu1 }
  0xa0   :  { %v353_v59 = vadd.f32 %v352_v57, %v333_v56 }
  0xa6   :  { %v371_v60 = vpop.f32.mrf.mxu2  ;;  %v335_v63 = vpop.f32.mrf.mxu0 }
  0xa7   :  { %v390_v61 = vpop.f32.mrf.mxu3  ;;  %v372_v62 = vadd.f32 %v371_v60, %v353_v59  ;;  %v354_v0 = vpop.f32.mrf.mxu1 }
  0xa8   :  { %v355_v2 = vadd.f32 %v354_v0, %v335_v63 }
  0xa9   :  { %v391_v1 = vadd.f32 %v390_v61, %v372_v62 }
  0xab   :  { %400 = vst [vmem:[%s849_s2] sm:$0xff] %v391_v1  ;;  %v417_v19 = vmul.f32 %v391_v1, %v391_v1 }
  0xae   :  { %v373_v3 = vpop.f32.mrf.mxu2  ;;  %v338_v6 = vpop.f32.mrf.mxu0 }
  0xaf   :  { %v392_v4 = vpop.f32.mrf.mxu3  ;;  %v374_v5 = vadd.f32 %v373_v3, %v355_v2  ;;  %v357_v7 = vpop.f32.mrf.mxu1 }
  0xb0   :  { %v358_v9 = vadd.f32 %v357_v7, %v338_v6 }
  0xb1   :  { %v393_v8 = vadd.f32 %v392_v4, %v374_v5 }
  0xb3   :  { %401 = vst [vmem:[%s849_s2 + $0x8] sm:$0xff] %v393_v8  ;;  %v418_v16 = vmul.f32 %v393_v8, %v393_v8  ;;  %v405_v20 = vadd.f32 %v393_v8, %v391_v1 }
  0xb5   :  { %v421_v24 = vadd.f32 %v418_v16, %v417_v19 }
  0xb6   :  { %v376_v10 = vpop.f32.mrf.mxu2  ;;  %v340_v14 = vpop.f32.mrf.mxu0 }
  0xb7   :  { %v395_v11 = vpop.f32.mrf.mxu3  ;;  %v377_v12 = vadd.f32 %v376_v10, %v358_v9  ;;  %v359_v15 = vpop.f32.mrf.mxu1 }
  0xb8   :  { %v360_v17 = vadd.f32 %v359_v15, %v340_v14 }
  0xb9   :  { %v396_v13 = vadd.f32 %v395_v11, %v377_v12 }
  0xbb   :  { %402 = vst [vmem:[%s849_s2 + $0x10] sm:$0xff] %v396_v13  ;;  %v419_v21 = vmul.f32 %v396_v13, %v396_v13  ;;  %v406_v25 = vadd.f32 %v405_v20, %v396_v13 }
  0xbd   :  { %v422_v27 = vadd.f32 %v421_v24, %v419_v21 }
  0xbe   :  { %v378_v18 = vpop.f32.mrf.mxu2 }
  0xbf   :  { %v379_v22 = vadd.f32 %v378_v18, %v360_v17  ;;  %v397_v23 = vpop.f32.mrf.mxu3 }
  0xc1   :  { %v398_v26 = vadd.f32 %v397_v23, %v379_v22 }
  0xc3   :  { %403 = vst [vmem:[%s849_s2 + $0x18] sm:$0xff] %v398_v26  ;;  %v407_v28 = vadd.f32 %v406_v25, %v398_v26  ;;  %v420_v29 = vmul.f32 %v398_v26, %v398_v26 }
  0xc5   :  { %v408_v30 = vrot.slane %v407_v28, 4  ;;  %v423_v31 = vadd.f32 %v422_v27, %v420_v29 }
  0xc7   :  { %v409_v32 = vadd.f32 %v408_v30, %v407_v28  ;;  %v424_v33 = vrot.slane %v423_v31, 4 }
  0xc9   :  { %v410_v34 = vrot.slane %v409_v32, 2  ;;  %v425_v35 = vadd.f32 %v424_v33, %v423_v31 }
  0xcb   :  { %v411_v36 = vadd.f32 %v410_v34, %v409_v32  ;;  %v426_v37 = vrot.slane %v425_v35, 2 }
  0xcd   :  { %v412_v38 = vrot.slane %v411_v36, 1  ;;  %v427_v39 = vadd.f32 %v426_v37, %v425_v35 }
  0xcf   :  { %v413_v41 = vadd.f32 %v412_v38, %v411_v36  ;;  %v428_v42 = vrot.slane %v427_v39, 1 }
  0xd1   :  { %v414_v44 = vadd.f32 %v413_v41, %v404_v40  ;;  %v429_v45 = vadd.f32 %v428_v42, %v427_v39 }
  0xd3   :  { %415 = vst [vmem:[%s847_s3] sm:$0x1] %v414_v44  ;;  %v430_v46 = vadd.f32 %v429_v45, %v416_v43 }
  0xd5   :  { %431 = vst [vmem:[%s848_s4] sm:$0x1] %v430_v46 }

// kernel: patch_discriminator_forward.15
= control target key start
LH: loop header
LB: loop body
LE: loop exit
PB: predicated region body
PF: predicated region fallthrough
CT: control target
= control target key end

     0   :  { %s1326_s1 = inlined_call_operand.vmem [shape: bf16[1024,128], index: 1, kind: input, shape index: {}]   ;;  %s1327_s2 = inlined_call_operand.vmem [shape: f32[1,128], index: 2, kind: input, shape index: {}]   ;;  %s1328_s0 = inlined_call_operand.vmem [shape: bf16[16,1024], index: 0, kind: input, shape index: {}]   ;;  %s1329_s3 = inlined_call_operand.vmem [shape: f32[16,128], index: 3, kind: output, shape index: {}]  }
   0x1   :  { %v999_v0 = vld [vmem:[%s1326_s1 + $0x38] sm:$0xff]  ;;  %v998_v4 = vld [vmem:[%s1326_s1 + $0x30] sm:$0xff]  ;;  %v997_v8 = vld [vmem:[%s1326_s1 + $0x28] sm:$0xff] }
   0x2   :  { %v1007_v1 = vld [vmem:[%s1326_s1 + $0x78] sm:$0xff]  ;;  %578 = vmatpush.bf16.msra.mxu0 %v999_v0  ;;  %v1006_v5 = vld [vmem:[%s1326_s1 + $0x70] sm:$0xff]  ;;  %v1005_v9 = vld [vmem:[%s1326_s1 + $0x68] sm:$0xff] }
   0x3   :  { %v1015_v2 = vld [vmem:[%s1326_s1 + $0xb8] sm:$0xff]  ;;  %592 = vmatpush.bf16.msra.mxu1 %v1007_v1  ;;  %v1014_v6 = vld [vmem:[%s1326_s1 + $0xb0] sm:$0xff]  ;;  %v1013_v10 = vld [vmem:[%s1326_s1 + $0xa8] sm:$0xff] }
   0x4   :  { %v1023_v3 = vld [vmem:[%s1326_s1 + $0xf8] sm:$0xff]  ;;  %606 = vmatpush.bf16.msra.mxu2 %v1015_v2  ;;  %v1022_v7 = vld [vmem:[%s1326_s1 + $0xf0] sm:$0xff]  ;;  %v1021_v11 = vld [vmem:[%s1326_s1 + $0xe8] sm:$0xff] }
   0x5   :  { %620 = vmatpush.bf16.msra.mxu3 %v1023_v3  ;;  %v996_v12 = vld [vmem:[%s1326_s1 + $0x20] sm:$0xff]  ;;  %v995_v16 = vld [vmem:[%s1326_s1 + $0x18] sm:$0xff]  ;;  %v994_v20 = vld [vmem:[%s1326_s1 + $0x10] sm:$0xff] }
   0x6   :  { %579 = vmatpush.bf16.msra.mxu0 %v998_v4  ;;  %v1004_v13 = vld [vmem:[%s1326_s1 + $0x60] sm:$0xff]  ;;  %v1003_v17 = vld [vmem:[%s1326_s1 + $0x58] sm:$0xff]  ;;  %v1002_v21 = vld [vmem:[%s1326_s1 + $0x50] sm:$0xff] }
   0x7   :  { %593 = vmatpush.bf16.msra.mxu1 %v1006_v5  ;;  %v1012_v14 = vld [vmem:[%s1326_s1 + $0xa0] sm:$0xff]  ;;  %v1011_v18 = vld [vmem:[%s1326_s1 + $0x98] sm:$0xff]  ;;  %v1010_v22 = vld [vmem:[%s1326_s1 + $0x90] sm:$0xff] }
   0x8   :  { %607 = vmatpush.bf16.msra.mxu2 %v1014_v6  ;;  %v1020_v15 = vld [vmem:[%s1326_s1 + $0xe0] sm:$0xff]  ;;  %v1019_v19 = vld [vmem:[%s1326_s1 + $0xd8] sm:$0xff]  ;;  %v1018_v23 = vld [vmem:[%s1326_s1 + $0xd0] sm:$0xff] }
   0x9   :  { %621 = vmatpush.bf16.msra.mxu3 %v1022_v7  ;;  %v993_v24 = vld [vmem:[%s1326_s1 + $0x8] sm:$0xff]  ;;  %v992_v28 = vld [vmem:[%s1326_s1] sm:$0xff]  ;;  %v1031_v32 = vld [vmem:[%s1326_s1 + $0x138] sm:$0xff] }
   0xa   :  { %580 = vmatpush.bf16.msra.mxu0 %v997_v8  ;;  %v1001_v25 = vld [vmem:[%s1326_s1 + $0x48] sm:$0xff]  ;;  %v1000_v29 = vld [vmem:[%s1326_s1 + $0x40] sm:$0xff]  ;;  %v1039_v33 = vld [vmem:[%s1326_s1 + $0x178] sm:$0xff] }
   0xb   :  { %594 = vmatpush.bf16.msra.mxu1 %v1005_v9  ;;  %v1009_v26 = vld [vmem:[%s1326_s1 + $0x88] sm:$0xff]  ;;  %v1008_v30 = vld [vmem:[%s1326_s1 + $0x80] sm:$0xff]  ;;  %v1047_v42 = vld [vmem:[%s1326_s1 + $0x1b8] sm:$0xff] }
   0xc   :  { %608 = vmatpush.bf16.msra.mxu2 %v1013_v10  ;;  %v1017_v27 = vld [vmem:[%s1326_s1 + $0xc8] sm:$0xff]  ;;  %v1016_v31 = vld [vmem:[%s1326_s1 + $0xc0] sm:$0xff]  ;;  %v1055_v43 = vld [vmem:[%s1326_s1 + $0x1f8] sm:$0xff] }
   0xd   :  { %622 = vmatpush.bf16.msra.mxu3 %v1021_v11  ;;  %v706_v34 = vld [vmem:[%s1328_s0 + $0x8] sm:$0xf]  ;;  %v698_v36 = vld [vmem:[%s1328_s0] sm:$0xf]  ;;  %v985_v38 = vld [vmem:[%s1328_s0 + $0xc] sm:$0xf] }
   0xe   :  { %581 = vmatpush.bf16.msra.mxu0 %v996_v12  ;;  %v989_v35 = vld [vmem:[%s1328_s0 + $0x24] sm:$0xf0]  ;;  %v988_v37 = vld [vmem:[%s1328_s0 + $0x1c] sm:$0xf0]  ;;  %v708_v39 = vld [vmem:[%s1328_s0 + $0x28] sm:$0xf0] }
   0xf   :  { %595 = vmatpush.bf16.msra.mxu1 %v1004_v13  ;;  %v984_v40 = vld [vmem:[%s1328_s0 + $0x4] sm:$0xf]  ;;  %v707_v44 = vor.u32 %v989_v35, %v706_v34  ;;  %v699_v45 = vor.u32 %v988_v37, %v698_v36  ;;  %v711_v46 = vor.u32 %v985_v38, %v708_v39  ;;  %v1030_v48 = vld [vmem:[%s1326_s1 + $0x130] sm:$0xff]  ;;  %v1029_v52 = vld [vmem:[%s1326_s1 + $0x128] sm:$0xff] }
  0x10   :  { %609 = vmatpush.bf16.msra.mxu2 %v1012_v14  ;;  %v700_v41 = vld [vmem:[%s1328_s0 + $0x20] sm:$0xf0]  ;;  %v1038_v49 = vld [vmem:[%s1326_s1 + $0x170] sm:$0xff]  ;;  %v1037_v53 = vld [vmem:[%s1326_s1 + $0x168] sm:$0xff] }
  0x11   :  { %623 = vmatpush.bf16.msra.mxu3 %v1020_v15  ;;  %v703_v47 = vor.u32 %v984_v40, %v700_v41  ;;  %v1046_v50 = vld [vmem:[%s1326_s1 + $0x1b0] sm:$0xff]  ;;  %v1045_v54 = vld [vmem:[%s1326_s1 + $0x1a8] sm:$0xff]  ;;  %v1028_v56 = vld [vmem:[%s1326_s1 + $0x120] sm:$0xff] }
  0x12   :  { %582 = vmatpush.bf16.msra.mxu0 %v995_v16  ;;  %v1054_v51 = vld [vmem:[%s1326_s1 + $0x1f0] sm:$0xff]  ;;  %v1053_v55 = vld [vmem:[%s1326_s1 + $0x1e8] sm:$0xff]  ;;  %v1036_v57 = vld [vmem:[%s1326_s1 + $0x160] sm:$0xff] }
  0x13   :  { %596 = vmatpush.bf16.msra.mxu1 %v1003_v17  ;;  %v1044_v58 = vld [vmem:[%s1326_s1 + $0x1a0] sm:$0xff]  ;;  %v1027_v60 = vld [vmem:[%s1326_s1 + $0x118] sm:$0xff]  ;;  %v1026_v0 = vld [vmem:[%s1326_s1 + $0x110] sm:$0xff] }
  0x14   :  { %610 = vmatpush.bf16.msra.mxu2 %v1011_v18  ;;  %v1052_v59 = vld [vmem:[%s1326_s1 + $0x1e0] sm:$0xff]  ;;  %v1035_v61 = vld [vmem:[%s1326_s1 + $0x158] sm:$0xff]  ;;  %v1034_v1 = vld [vmem:[%s1326_s1 + $0x150] sm:$0xff] }
  0x15   :  { %624 = vmatpush.bf16.msra.mxu3 %v1019_v19  ;;  %v1043_v62 = vld [vmem:[%s1326_s1 + $0x198] sm:$0xff]  ;;  %v1042_v2 = vld [vmem:[%s1326_s1 + $0x190] sm:$0xff]  ;;  %v1025_v4 = vld [vmem:[%s1326_s1 + $0x108] sm:$0xff] }
  0x16   :  { %583 = vmatpush.bf16.msra.mxu0 %v994_v20  ;;  %v1051_v63 = vld [vmem:[%s1326_s1 + $0x1d8] sm:$0xff]  ;;  %v1050_v3 = vld [vmem:[%s1326_s1 + $0x1d0] sm:$0xff]  ;;  %v1033_v5 = vld [vmem:[%s1326_s1 + $0x148] sm:$0xff] }
  0x17   :  { %597 = vmatpush.bf16.msra.mxu1 %v1002_v21  ;;  %v1041_v6 = vld [vmem:[%s1326_s1 + $0x188] sm:$0xff]  ;;  %v1024_v8 = vld [vmem:[%s1326_s1 + $0x100] sm:$0xff]  ;;  %v714_v12 = vld [vmem:[%s1328_s0 + $0x10] sm:$0xf] }
  0x18   :  { %611 = vmatpush.bf16.msra.mxu2 %v1010_v22  ;;  %v1049_v7 = vld [vmem:[%s1326_s1 + $0x1c8] sm:$0xff]  ;;  %v1032_v9 = vld [vmem:[%s1326_s1 + $0x140] sm:$0xff]  ;;  %v990_v13 = vld [vmem:[%s1328_s0 + $0x2c] sm:$0xf0] }
  0x19   :  { %625 = vmatpush.bf16.msra.mxu3 %v1018_v23  ;;  %v1040_v10 = vld [vmem:[%s1326_s1 + $0x180] sm:$0xff]  ;;  %v986_v14 = vld [vmem:[%s1328_s0 + $0x14] sm:$0xf]  ;;  %v722_v16 = vld [vmem:[%s1328_s0 + $0x18] sm:$0xf]  ;;  %v715_v20 = vor.u32 %v990_v13, %v714_v12 }
  0x1a   :  { %584 = vmatpush.bf16.msra.mxu0 %v993_v24  ;;  %v1048_v11 = vld [vmem:[%s1326_s1 + $0x1c0] sm:$0xff]  ;;  %v716_v15 = vld [vmem:[%s1328_s0 + $0x30] sm:$0xf0]  ;;  %v991_v17 = vld [vmem:[%s1328_s0 + $0x34] sm:$0xf0] }
  0x1b   :  { %598 = vmatpush.bf16.msra.mxu1 %v1001_v25  ;;  %v987_v18 = vld [vmem:[%s1328_s0 + $0x1c] sm:$0xf]  ;;  %v719_v21 = vor.u32 %v986_v14, %v716_v15  ;;  %v723_v22 = vor.u32 %v991_v17, %v722_v16  ;;  %v1056_v25 = vld [vmem:[%s1327_s2] ss:$0 sm:$0xff] }
  0x1c   :  { %612 = vmatpush.bf16.msra.mxu2 %v1009_v26  ;;  %v724_v19 = vld [vmem:[%s1328_s0 + $0x38] sm:$0xf0] }
  0x1d   :  { %626 = vmatpush.bf16.msra.mxu3 %v1017_v27  ;;  %v727_v23 = vor.u32 %v987_v18, %v724_v19 }
  0x1e   :  { %585 = vmatpush.bf16.msra.mxu0 %v992_v28 }
  0x1f   :  { %599 = vmatpush.bf16.msra.mxu1 %v1000_v29 }
  0x20   :  { %613 = vmatpush.bf16.msra.mxu2 %v1008_v30 }
  0x21   :  { %627 = vmatpush.bf16.msra.mxu3 %v1016_v31  ;;  %586 = vmatmul.bf16.vlgmr.msra.gmra.mxu0 %v699_v45 }
  0x22   :  { %634 = vmatpush.bf16.msrb.mxu0 %v1031_v32  ;;  %600 = vmatmul.bf16.vlgmr.msra.gmra.mxu1 %v703_v47 }
  0x23   :  { %648 = vmatpush.bf16.msrb.mxu1 %v1039_v33  ;;  %614 = vmatmul.bf16.vlgmr.msra.gmra.mxu2 %v707_v44 }
  0x24   :  { %662 = vmatpush.bf16.msrb.mxu2 %v1047_v42  ;;  %628 = vmatmul.bf16.vlgmr.msra.gmra.mxu3 %v711_v46 }
  0x25   :  { %676 = vmatpush.bf16.msrb.mxu3 %v1055_v43 }
  0x26   :  { %635 = vmatpush.bf16.msrb.mxu0 %v1030_v48 }
  0x27   :  { %649 = vmatpush.bf16.msrb.mxu1 %v1038_v49 }
  0x28   :  { %663 = vmatpush.bf16.msrb.mxu2 %v1046_v50 }
  0x29   :  { %677 = vmatpush.bf16.msrb.mxu3 %v1054_v51 }
  0x2a   :  { %636 = vmatpush.bf16.msrb.mxu0 %v1029_v52 }
  0x2b   :  { %650 = vmatpush.bf16.msrb.mxu1 %v1037_v53 }
  0x2c   :  { %664 = vmatpush.bf16.msrb.mxu2 %v1045_v54 }
  0x2d   :  { %678 = vmatpush.bf16.msrb.mxu3 %v1053_v55 }
  0x2e   :  { %637 = vmatpush.bf16.msrb.mxu0 %v1028_v56 }
  0x2f   :  { %651 = vmatpush.bf16.msrb.mxu1 %v1036_v57 }
  0x30   :  { %665 = vmatpush.bf16.msrb.mxu2 %v1044_v58 }
  0x31   :  { %679 = vmatpush.bf16.msrb.mxu3 %v1052_v59 }
  0x32   :  { %638 = vmatpush.bf16.msrb.mxu0 %v1027_v60 }
  0x33   :  { %652 = vmatpush.bf16.msrb.mxu1 %v1035_v61 }
  0x34   :  { %666 = vmatpush.bf16.msrb.mxu2 %v1043_v62 }
  0x35   :  { %680 = vmatpush.bf16.msrb.mxu3 %v1051_v63 }
  0x36   :  { %639 = vmatpush.bf16.msrb.mxu0 %v1026_v0 }
  0x37   :  { %653 = vmatpush.bf16.msrb.mxu1 %v1034_v1 }
  0x38   :  { %667 = vmatpush.bf16.msrb.mxu2 %v1042_v2 }
  0x39   :  { %681 = vmatpush.bf16.msrb.mxu3 %v1050_v3 }
  0x3a   :  { %640 = vmatpush.bf16.msrb.mxu0 %v1025_v4 }
  0x3b   :  { %654 = vmatpush.bf16.msrb.mxu1 %v1033_v5 }
  0x3c   :  { %668 = vmatpush.bf16.msrb.mxu2 %v1041_v6 }
  0x3d   :  { %682 = vmatpush.bf16.msrb.mxu3 %v1049_v7 }
  0x3e   :  { %641 = vmatpush.bf16.msrb.mxu0 %v1024_v8 }
  0x3f   :  { %655 = vmatpush.bf16.msrb.mxu1 %v1032_v9 }
  0x40   :  { %669 = vmatpush.bf16.msrb.mxu2 %v1040_v10 }
  0x41   :  { %683 = vmatpush.bf16.msrb.mxu3 %v1048_v11  ;;  %642 = vmatmul.bf16.vlgmr.msrb.gmra.mxu0 %v715_v20 }
  0x42   :  { %656 = vmatmul.bf16.vlgmr.msrb.gmra.mxu1 %v719_v21 }
  0x43   :  { %670 = vmatmul.bf16.vlgmr.msrb.gmra.mxu2 %v723_v22 }
  0x44   :  { %684 = vmatmul.bf16.vlgmr.msrb.gmra.mxu3 %v727_v23 }
  0x9e   :  { %v587_v24 = vpop.f32.mrf.mxu0 }
  0x9f   :  { %v601_v26 = vpop.f32.mrf.mxu1  ;;  %v588_v27 = vadd.f32 %v1056_v25, %v587_v24 }
  0xa1   :  { %v602_v30 = vadd.f32 %v601_v26, %v588_v27 }
  0xa6   :  { %v615_v28 = vpop.f32.mrf.mxu2  ;;  %v589_v31 = vpop.f32.mrf.mxu0 }
  0xa7   :  { %v629_v29 = vpop.f32.mrf.mxu3  ;;  %v603_v32 = vpop.f32.mrf.mxu1  ;;  %v616_v33 = vadd.f32 %v615_v28, %v602_v30  ;;  %v590_v34 = vadd.f32 %v1056_v25, %v589_v31 }
  0xa9   :  { %v630_v37 = vadd.f32 %v629_v29, %v616_v33  ;;  %v604_v38 = vadd.f32 %v603_v32, %v590_v34 }
  0xae   :  { %v617_v35 = vpop.f32.mrf.mxu2 }
  0xaf   :  { %v631_v36 = vpop.f32.mrf.mxu3  ;;  %v618_v42 = vadd.f32 %v617_v35, %v604_v38 }
  0xb1   :  { %v632_v46 = vadd.f32 %v631_v36, %v618_v42 }
  0xbe   :  { %v643_v39 = vpop.f32.mrf.mxu0 }
  0xbf   :  { %v644_v40 = vadd.f32 %v643_v39, %v630_v37  ;;  %v657_v41 = vpop.f32.mrf.mxu1 }
  0xc1   :  { %v658_v43 = vadd.f32 %v657_v41, %v644_v40 }
  0xc6   :  { %v671_v44 = vpop.f32.mrf.mxu2  ;;  %v645_v48 = vpop.f32.mrf.mxu0 }
  0xc7   :  { %v685_v45 = vpop.f32.mrf.mxu3  ;;  %v672_v47 = vadd.f32 %v671_v44, %v658_v43  ;;  %v646_v50 = vadd.f32 %v645_v48, %v632_v46  ;;  %v659_v51 = vpop.f32.mrf.mxu1 }
  0xc9   :  { %v686_v49 = vadd.f32 %v685_v45, %v672_v47  ;;  %v660_v52 = vadd.f32 %v659_v51, %v646_v50 }
  0xcb   :  { %690 = vst [vmem:[%s1329_s3] sm:$0xff] %v686_v49 }
  0xce   :  { %v673_v53 = vpop.f32.mrf.mxu2 }
  0xcf   :  { %v674_v54 = vadd.f32 %v673_v53, %v660_v52  ;;  %v687_v55 = vpop.f32.mrf.mxu3 }
  0xd1   :  { %v688_v56 = vadd.f32 %v687_v55, %v674_v54 }
  0xd3   :  { %691 = vst [vmem:[%s1329_s3 + $0x8] sm:$0xff] %v688_v56 }

</bundles_post_ra>
